<compile_context>
chip_gen: v7x
topology: tpu7x:2x2x1
jax: 0.10.0
libtpu: 0.0.40
codegen_flags: <defaults>
</compile_context>

<pallas_src>
import numpy as np
import jax
import jax.numpy as jnp
from jax.experimental import pallas as pl
from jax.experimental.pallas import tpu as pltpu

BOARD_HW = 12            # 12x12 board -> 32*3*3 = 288 conv features
MOVE_LEN = 4             # 288 + 4 = 292 = l1 input size of the torch module
HIDDEN_UNITS = (32, 32)
N_OUTPUTS = 8

C1, K1, P1 = 16, 5, 2    # conv1: 1 -> 16, k=5, pad=2
C2, K2, P2 = 32, 3, 1    # conv2: 16 -> 32, k=3, pad=1
HW1 = BOARD_HW           # 12
HW2 = HW1 // 2           # 6   (after pool1)
HW3 = HW2 // 2           # 3   (after pool2)
SP2 = HW2 * HW2          # 36
SP3 = HW3 * HW3          # 9
N_FEAT = C2 * SP3        # 288
L1_IN = N_FEAT + MOVE_LEN  # 292

# TODO(synk): CL3 (Conv2d(32, 48, 3) + ReLU) is created in TorchCnn.__init__ but never
# used in forward(), so it is intentionally omitted here.


# ----------------------------------------------------------------------------
# One-time constants (tiny index / selection tables)
# ----------------------------------------------------------------------------
def _conv1_pool_index() -> np.ndarray:
    """IDX[m*25 + kh*5 + kw, i*6 + j] = flat index into the zero-padded (16,16) board
    of the input pixel needed by conv1 tap (kh,kw) at output pixel (2i+di, 2j+dj),
    where m = di*2+dj is the max-pool corner."""
    hp = HW1 + 2 * P1                                  # 16
    idx = np.zeros((4 * K1 * K1, SP2), dtype=np.int32)
    for di in range(2):
        for dj in range(2):
            m = di * 2 + dj
            for kh in range(K1):
                for kw in range(K1):
                    k = kh * K1 + kw
                    for i in range(HW2):
                        for j in range(HW2):
                            idx[m * K1 * K1 + k, i * HW2 + j] = \
                                (2 * i + di + kh) * hp + (2 * j + dj + kw)
    return idx


def _conv2_gather() -> np.ndarray:
    """G2[k, u, oi*6+oj] = 1 iff p1 flat pixel u is the source of conv2 tap k at
    output pixel (oi, oj) (zero column where the tap falls in the padding)."""
    g = np.zeros((K2 * K2, SP2, SP2), dtype=np.float32)
    for kh in range(K2):
        for kw in range(K2):
            k = kh * K2 + kw
            for oi in range(HW2):
                for oj in range(HW2):
                    si, sj = oi + kh - P2, oj + kw - P2
                    if 0 <= si < HW2 and 0 <= sj < HW2:
                        g[k, si * HW2 + sj, oi * HW2 + oj] = 1.0
    return g


def _pool2_select() -> np.ndarray:
    """S2[m, u, pi*3+pj] picks corner m of each 2x2 stride-2 window of the 6x6 map."""
    s = np.zeros((4, SP2, SP3), dtype=np.float32)
    for di in range(2):
        for dj in range(2):
            m = di * 2 + dj
            for pi in range(HW3):
                for pj in range(HW3):
                    s[m, (2 * pi + di) * HW2 + (2 * pj + dj), pi * HW3 + pj] = 1.0
    return s


def _flatten_expand() -> np.ndarray:
    """E[s, j] = 1 iff j % 9 == s   (lane-expands (32,9) to (32,288))."""
    e = np.zeros((SP3, N_FEAT), dtype=np.float32)
    for j in range(N_FEAT):
        e[j % SP3, j] = 1.0
    return e


def _flatten_mask() -> np.ndarray:
    """M[c, j] = 1 iff j // 9 == c  (block-diagonal mask for the NCHW flatten)."""
    msk = np.zeros((C2, N_FEAT), dtype=np.float32)
    for j in range(N_FEAT):
        msk[j // SP3, j] = 1.0
    return msk


def make_consts():
    return {
        "idx1": jnp.asarray(_conv1_pool_index()),   # (100, 36) int32
        "g2":   jnp.asarray(_conv2_gather()),       # (9, 36, 36)
        "s2":   jnp.asarray(_pool2_select()),       # (4, 36, 9)
        "e":    jnp.asarray(_flatten_expand()),     # (9, 288)
        "mask": jnp.asarray(_flatten_mask()),       # (32, 288)
    }


# ----------------------------------------------------------------------------
# One-time parameter preparation (hoisted out of the per-call path)
# ----------------------------------------------------------------------------
def prepare_params(params):
    w1, b1 = params["conv1"]
    w2, b2 = params["conv2"]
    wl1, bl1 = params["l1"]
    wo, bo = params["output"]
    w1m = w1.reshape(C1, K1 * K1)                                           # (16, 25)
    return {
        # block-diag of 4 copies: one matmul evaluates conv1 at all 4 pool corners
        "w1blk": jnp.kron(jnp.eye(4, dtype=jnp.float32), w1m),              # (64, 100)
        "b1c": b1.reshape(C1, 1),
        "w2m": jnp.transpose(w2, (0, 2, 3, 1)).reshape(C2, K2 * K2 * C1),   # (32, 144)
        "b2c": b2.reshape(C2, 1),
        "wl1_feat": wl1[:, :N_FEAT].T,                                      # (288, h0)
        "wl1_move": jnp.pad(wl1[:, N_FEAT:].T, ((0, 4), (0, 0))),           # (8, h0)
        "bl1": bl1.reshape(1, -1),
        "hidden": [(w.T, b.reshape(1, -1)) for (w, b) in params["hidden"]],
        "wout": wo.T,                                                       # (h_last, 8)
        "bout": bo.reshape(1, -1),
    }


# ----------------------------------------------------------------------------
# The single fused Pallas kernel
# ----------------------------------------------------------------------------
def fused_forward_kernel(*refs):
    (patches_ref, move_ref, w1b_ref, b1_ref, g2_ref, w2_ref, b2_ref,
     s2_ref, e_ref, mask_ref) = refs[:10]
    mlp_refs = refs[10:-2]
    out_ref = refs[-2]
    patch_scr = refs[-1]                 # (144, 36) VMEM scratch (conv2 im2col)

    # ---- Stage 1: Conv2d(1,16,k5,p2) + ReLU + MaxPool2d(2,2), one matmul ----
    # rows of z1 = pooling corner m (blocks of 16 channels), lanes = pooled 6x6 pos.
    z1 = jnp.dot(w1b_ref[...], patches_ref[...],
                 preferred_element_type=jnp.float32)                        # (64, 36)
    m1 = jnp.maximum(jnp.maximum(z1[0:C1, :], z1[C1:2 * C1, :]),
                     jnp.maximum(z1[2 * C1:3 * C1, :], z1[3 * C1:4 * C1, :]))
    a1 = jnp.maximum(m1 + b1_ref[...], 0.0)                                 # (16, 36)

    # ---- Stage 2: Conv2d(16,32,k3,p1) via im2col + ReLU + MaxPool2d(2,2) ----
    for k in range(K2 * K2):
        patch_scr[k * C1:(k + 1) * C1, :] = jnp.dot(
            a1, g2_ref[k], preferred_element_type=jnp.float32)              # (16, 36)
    z2 = jnp.dot(w2_ref[...], patch_scr[...],
                 preferred_element_type=jnp.float32) + b2_ref[...]          # (32, 36)
    c0 = jnp.dot(z2, s2_ref[0], preferred_element_type=jnp.float32)
    c1 = jnp.dot(z2, s2_ref[1], preferred_element_type=jnp.float32)
    c2 = jnp.dot(z2, s2_ref[2], preferred_element_type=jnp.float32)
    c3 = jnp.dot(z2, s2_ref[3], preferred_element_type=jnp.float32)
    a2 = jnp.maximum(jnp.maximum(jnp.maximum(c0, c1), jnp.maximum(c2, c3)), 0.0)  # (32, 9)

    # ---- NCHW flatten (32, 9) -> (1, 288): lane-expand, mask, sublane-sum ----
    feat = jnp.sum(jnp.dot(a2, e_ref[...], preferred_element_type=jnp.float32)
                   * mask_ref[...], axis=0, keepdims=True)                  # (1, 288)

    # ---- MLP: l1 (split conv/move parts, no activation) -> (hidden+tanh)* -> output
    wl1f, wl1m, bl1 = mlp_refs[0], mlp_refs[1], mlp_refs[2]
    out = (jnp.dot(feat, wl1f[...], preferred_element_type=jnp.float32)
           + jnp.dot(move_ref[...], wl1m[...], preferred_element_type=jnp.float32)
           + bl1[...])
    rest = mlp_refs[3:]
    for i in range((len(rest) - 2) // 2):                                   # hidden layers
        out = jnp.tanh(jnp.dot(out, rest[2 * i][...],
                               preferred_element_type=jnp.float32) + rest[2 * i + 1][...])
    out_ref[...] = (jnp.dot(out, rest[-2][...], preferred_element_type=jnp.float32)
                    + rest[-1][...])


# ----------------------------------------------------------------------------
# Wrapper (per-call glue: pad + im2col gather of the board, then one pallas_call)
# ----------------------------------------------------------------------------
def torch_cnn_forward(board, move, prepped, consts):
    xp = jnp.pad(board.reshape(HW1, HW1).astype(jnp.float32), P1)           # (16, 16)
    patches1 = jnp.take(xp.reshape(-1), consts["idx1"], axis=0)             # (100, 36)
    move_row = jnp.pad(move.astype(jnp.float32).reshape(1, MOVE_LEN),
                       ((0, 0), (0, 4)))                                    # (1, 8)

    mlp_args = [prepped["wl1_feat"], prepped["wl1_move"], prepped["bl1"]]
    for w, b in prepped["hidden"]:
        mlp_args.extend([w, b])
    mlp_args.extend([prepped["wout"], prepped["bout"]])

    args = [patches1, move_row, prepped["w1blk"], prepped["b1c"], consts["g2"],
            prepped["w2m"], prepped["b2c"], consts["s2"], consts["e"], consts["mask"],
            *mlp_args]

    out = pl.pallas_call(
        fused_forward_kernel,
        out_shape=jax.ShapeDtypeStruct((1, N_OUTPUTS), jnp.float32),
        in_specs=[pl.BlockSpec(memory_space=pltpu.MemorySpace.VMEM)] * len(args),
        out_specs=pl.BlockSpec(memory_space=pltpu.MemorySpace.VMEM),
        scratch_shapes=[pltpu.VMEM((K2 * K2 * C1, SP2), jnp.float32)],
    )(*args)
    return out[0]                                                           # (8,)


# ----------------------------------------------------------------------------
# Deterministic parameters + pure-JAX reference
# ----------------------------------------------------------------------------
def make_params(key):
    def nrm(k, shape, scale=0.1):
        return (scale * jax.random.normal(k, shape)).astype(jnp.float32)

    n_keys = 10 + 2 * max(0, len(HIDDEN_UNITS) - 1)
    ks = list(jax.random.split(key, n_keys))
    params = {
        "conv1": (nrm(ks[0], (C1, 1, K1, K1)), nrm(ks[1], (C1,))),
        "conv2": (nrm(ks[2], (C2, C1, K2, K2)), nrm(ks[3], (C2,))),
        "l1":    (nrm(ks[4], (HIDDEN_UNITS[0], L1_IN)), nrm(ks[5], (HIDDEN_UNITS[0],))),
        "hidden": [],
        "output": (nrm(ks[6], (N_OUTPUTS, HIDDEN_UNITS[-1])), nrm(ks[7], (N_OUTPUTS,))),
    }
    for i in range(1, len(HIDDEN_UNITS)):
        params["hidden"].append(
            (nrm(ks[8 + 2 * (i - 1)], (HIDDEN_UNITS[i], HIDDEN_UNITS[i - 1])),
             nrm(ks[9 + 2 * (i - 1)], (HIDDEN_UNITS[i],))))
    return params


def reference_forward(board, move, params):
    x = board.reshape(1, 1, HW1, HW1).astype(jnp.float32)
    w1, b1 = params["conv1"]
    w2, b2 = params["conv2"]
    y = jax.lax.conv_general_dilated(x, w1, (1, 1), [(P1, P1), (P1, P1)],
                                     dimension_numbers=("NCHW", "OIHW", "NCHW"),
                                     precision=jax.lax.Precision.HIGHEST)
    y = jnp.maximum(y + b1[None, :, None, None], 0.0)
    y = jax.lax.reduce_window(y, -jnp.inf, jax.lax.max, (1, 1, 2, 2), (1, 1, 2, 2), "VALID")
    y = jax.lax.conv_general_dilated(y, w2, (1, 1), [(P2, P2), (P2, P2)],
                                     dimension_numbers=("NCHW", "OIHW", "NCHW"),
                                     precision=jax.lax.Precision.HIGHEST)
    y = jnp.maximum(y + b2[None, :, None, None], 0.0)
    y = jax.lax.reduce_window(y, -jnp.inf, jax.lax.max, (1, 1, 2, 2), (1, 1, 2, 2), "VALID")
    out = jnp.concatenate([y.reshape(-1), move.astype(jnp.float32)], 0)
    wl1, bl1 = params["l1"]
    out = out @ wl1.T + bl1
    for (w, b) in params["hidden"]:
        out = jnp.tanh(out @ w.T + b)
    wo, bo = params["output"]
    return out @ wo.T + bo


if __name__ == "__main__":
    key = jax.random.PRNGKey(0)
    k_param, k_board, k_move = jax.random.split(key, 3)

    params = make_params(k_param)
    board = jax.random.normal(k_board, (1, HW1, HW1), dtype=jnp.float32)
    move = jax.random.normal(k_move, (MOVE_LEN,), dtype=jnp.float32)

    prepped = prepare_params(params)   # one-time param re-layout (hoisted from fwd)
    consts = make_consts()             # one-time tiny index / selection tables

    fwd = jax.jit(torch_cnn_forward)
    out = jax.block_until_ready(fwd(board, move, prepped, consts))

    ref = reference_forward(board, move, params)
    max_err = float(jnp.max(jnp.abs(out - ref)))
    if not np.allclose(np.asarray(out), np.asarray(ref), rtol=5e-2, atol=5e-2):
        raise SystemExit(f"mismatch vs pure-JAX reference, max abs err = {max_err}")
    print("KERNEL_OK")
</pallas_src>

<mosaic_0001>
module attributes {stable_mosaic.version = 11 : i64} {
  func.func @fused_forward_kernel(%arg0: memref<100x36xf32, #tpu.memory_space<vmem>>, %arg1: memref<1x8xf32, #tpu.memory_space<vmem>>, %arg2: memref<64x100xf32, #tpu.memory_space<vmem>>, %arg3: memref<16x1xf32, #tpu.memory_space<vmem>>, %arg4: memref<9x36x36xf32, #tpu.memory_space<vmem>>, %arg5: memref<32x144xf32, #tpu.memory_space<vmem>>, %arg6: memref<32x1xf32, #tpu.memory_space<vmem>>, %arg7: memref<4x36x9xf32, #tpu.memory_space<vmem>>, %arg8: memref<9x288xf32, #tpu.memory_space<vmem>>, %arg9: memref<32x288xf32, #tpu.memory_space<vmem>>, %arg10: memref<288x32xf32, #tpu.memory_space<vmem>>, %arg11: memref<8x32xf32, #tpu.memory_space<vmem>>, %arg12: memref<1x32xf32, #tpu.memory_space<vmem>>, %arg13: memref<32x32xf32, #tpu.memory_space<vmem>>, %arg14: memref<1x32xf32, #tpu.memory_space<vmem>>, %arg15: memref<32x8xf32, #tpu.memory_space<vmem>>, %arg16: memref<1x8xf32, #tpu.memory_space<vmem>>, %arg17: memref<1x8xf32, #tpu.memory_space<vmem>>, %arg18: memref<144x36xf32, #tpu.memory_space<vmem>>) attributes {dimension_semantics = [], scalar_prefetch = 0 : i64, scratch_operands = 1 : i64, tpu.core_type = #tpu.core_type<tc>} {
    %c0 = arith.constant 0 : index
    %c0_0 = arith.constant 0 : index
    %0 = vector.load %arg2[%c0, %c0_0] : memref<64x100xf32, #tpu.memory_space<vmem>>, vector<64x100xf32>
    %c0_1 = arith.constant 0 : index
    %c0_2 = arith.constant 0 : index
    %1 = vector.load %arg0[%c0_1, %c0_2] : memref<100x36xf32, #tpu.memory_space<vmem>>, vector<100x36xf32>
    %cst = arith.constant dense<0.000000e+00> : vector<64x36xf32>
    %2 = tpu.matmul %0, %1, %cst {dimension_numbers = #tpu.dot_dimension_numbers<[1], [0], [0], [1], [0, 0, 1, 1], [], []>} : vector<64x100xf32>, vector<100x36xf32>, vector<64x36xf32> -> vector<64x36xf32>
    %3 = vector.extract_strided_slice %2 {offsets = [0, 0], sizes = [16, 36], strides = [1, 1]} : vector<64x36xf32> to vector<16x36xf32>
    %4 = vector.extract_strided_slice %2 {offsets = [16, 0], sizes = [16, 36], strides = [1, 1]} : vector<64x36xf32> to vector<16x36xf32>
    %5 = arith.maximumf %3, %4 : vector<16x36xf32>
    %6 = vector.extract_strided_slice %2 {offsets = [32, 0], sizes = [16, 36], strides = [1, 1]} : vector<64x36xf32> to vector<16x36xf32>
    %7 = vector.extract_strided_slice %2 {offsets = [48, 0], sizes = [16, 36], strides = [1, 1]} : vector<64x36xf32> to vector<16x36xf32>
    %8 = arith.maximumf %6, %7 : vector<16x36xf32>
    %9 = arith.maximumf %5, %8 : vector<16x36xf32>
    %c0_3 = arith.constant 0 : index
    %c0_4 = arith.constant 0 : index
    %10 = vector.load %arg3[%c0_3, %c0_4] : memref<16x1xf32, #tpu.memory_space<vmem>>, vector<16x1xf32>
    %11 = vector.broadcast %10 : vector<16x1xf32> to vector<16x36xf32>
    %12 = arith.addf %9, %11 : vector<16x36xf32>
    %cst_5 = arith.constant 0.000000e+00 : f32
    %13 = vector.broadcast %cst_5 : f32 to vector<16x36xf32>
    %14 = arith.maximumf %12, %13 : vector<16x36xf32>
    %c0_6 = arith.constant 0 : index
    %c0_7 = arith.constant 0 : index
    %c0_8 = arith.constant 0 : index
    %15 = vector.load %arg4[%c0_6, %c0_7, %c0_8] : memref<9x36x36xf32, #tpu.memory_space<vmem>>, vector<1x36x36xf32>
    %16 = vector.shape_cast %15 : vector<1x36x36xf32> to vector<36x36xf32>
    %cst_9 = arith.constant dense<0.000000e+00> : vector<16x36xf32>
    %17 = tpu.matmul %14, %16, %cst_9 {dimension_numbers = #tpu.dot_dimension_numbers<[1], [0], [0], [1], [0, 0, 1, 1], [], []>} : vector<16x36xf32>, vector<36x36xf32>, vector<16x36xf32> -> vector<16x36xf32>
    %c0_10 = arith.constant 0 : index
    %c0_11 = arith.constant 0 : index
    %18 = vector.load %arg18[%c0_10, %c0_11] : memref<144x36xf32, #tpu.memory_space<vmem>>, vector<16x36xf32>
    tpu.vector_store %arg18[%c0_10, %c0_11], %17 {strides = array<i32>} : memref<144x36xf32, #tpu.memory_space<vmem>>, vector<16x36xf32>,
    %c1 = arith.constant 1 : index
    %c0_12 = arith.constant 0 : index
    %c0_13 = arith.constant 0 : index
    %19 = vector.load %arg4[%c1, %c0_12, %c0_13] : memref<9x36x36xf32, #tpu.memory_space<vmem>>, vector<1x36x36xf32>
    %20 = vector.shape_cast %19 : vector<1x36x36xf32> to vector<36x36xf32>
    %cst_14 = arith.constant dense<0.000000e+00> : vector<16x36xf32>
    %21 = tpu.matmul %14, %20, %cst_14 {dimension_numbers = #tpu.dot_dimension_numbers<[1], [0], [0], [1], [0, 0, 1, 1], [], []>} : vector<16x36xf32>, vector<36x36xf32>, vector<16x36xf32> -> vector<16x36xf32>
    %c16 = arith.constant 16 : index
    %c0_15 = arith.constant 0 : index
    %22 = vector.load %arg18[%c16, %c0_15] : memref<144x36xf32, #tpu.memory_space<vmem>>, vector<16x36xf32>
    tpu.vector_store %arg18[%c16, %c0_15], %21 {strides = array<i32>} : memref<144x36xf32, #tpu.memory_space<vmem>>, vector<16x36xf32>,
    %c2 = arith.constant 2 : index
    %c0_16 = arith.constant 0 : index
    %c0_17 = arith.constant 0 : index
    %23 = vector.load %arg4[%c2, %c0_16, %c0_17] : memref<9x36x36xf32, #tpu.memory_space<vmem>>, vector<1x36x36xf32>
    %24 = vector.shape_cast %23 : vector<1x36x36xf32> to vector<36x36xf32>
    %cst_18 = arith.constant dense<0.000000e+00> : vector<16x36xf32>
    %25 = tpu.matmul %14, %24, %cst_18 {dimension_numbers = #tpu.dot_dimension_numbers<[1], [0], [0], [1], [0, 0, 1, 1], [], []>} : vector<16x36xf32>, vector<36x36xf32>, vector<16x36xf32> -> vector<16x36xf32>
    %c32 = arith.constant 32 : index
    %c0_19 = arith.constant 0 : index
    %26 = vector.load %arg18[%c32, %c0_19] : memref<144x36xf32, #tpu.memory_space<vmem>>, vector<16x36xf32>
    tpu.vector_store %arg18[%c32, %c0_19], %25 {strides = array<i32>} : memref<144x36xf32, #tpu.memory_space<vmem>>, vector<16x36xf32>,
    %c3 = arith.constant 3 : index
    %c0_20 = arith.constant 0 : index
    %c0_21 = arith.constant 0 : index
    %27 = vector.load %arg4[%c3, %c0_20, %c0_21] : memref<9x36x36xf32, #tpu.memory_space<vmem>>, vector<1x36x36xf32>
    %28 = vector.shape_cast %27 : vector<1x36x36xf32> to vector<36x36xf32>
    %cst_22 = arith.constant dense<0.000000e+00> : vector<16x36xf32>
    %29 = tpu.matmul %14, %28, %cst_22 {dimension_numbers = #tpu.dot_dimension_numbers<[1], [0], [0], [1], [0, 0, 1, 1], [], []>} : vector<16x36xf32>, vector<36x36xf32>, vector<16x36xf32> -> vector<16x36xf32>
    %c48 = arith.constant 48 : index
    %c0_23 = arith.constant 0 : index
    %30 = vector.load %arg18[%c48, %c0_23] : memref<144x36xf32, #tpu.memory_space<vmem>>, vector<16x36xf32>
    tpu.vector_store %arg18[%c48, %c0_23], %29 {strides = array<i32>} : memref<144x36xf32, #tpu.memory_space<vmem>>, vector<16x36xf32>,
    %c4 = arith.constant 4 : index
    %c0_24 = arith.constant 0 : index
    %c0_25 = arith.constant 0 : index
    %31 = vector.load %arg4[%c4, %c0_24, %c0_25] : memref<9x36x36xf32, #tpu.memory_space<vmem>>, vector<1x36x36xf32>
    %32 = vector.shape_cast %31 : vector<1x36x36xf32> to vector<36x36xf32>
    %cst_26 = arith.constant dense<0.000000e+00> : vector<16x36xf32>
    %33 = tpu.matmul %14, %32, %cst_26 {dimension_numbers = #tpu.dot_dimension_numbers<[1], [0], [0], [1], [0, 0, 1, 1], [], []>} : vector<16x36xf32>, vector<36x36xf32>, vector<16x36xf32> -> vector<16x36xf32>
    %c64 = arith.constant 64 : index
    %c0_27 = arith.constant 0 : index
    %34 = vector.load %arg18[%c64, %c0_27] : memref<144x36xf32, #tpu.memory_space<vmem>>, vector<16x36xf32>
    tpu.vector_store %arg18[%c64, %c0_27], %33 {strides = array<i32>} : memref<144x36xf32, #tpu.memory_space<vmem>>, vector<16x36xf32>,
    %c5 = arith.constant 5 : index
    %c0_28 = arith.constant 0 : index
    %c0_29 = arith.constant 0 : index
    %35 = vector.load %arg4[%c5, %c0_28, %c0_29] : memref<9x36x36xf32, #tpu.memory_space<vmem>>, vector<1x36x36xf32>
    %36 = vector.shape_cast %35 : vector<1x36x36xf32> to vector<36x36xf32>
    %cst_30 = arith.constant dense<0.000000e+00> : vector<16x36xf32>
    %37 = tpu.matmul %14, %36, %cst_30 {dimension_numbers = #tpu.dot_dimension_numbers<[1], [0], [0], [1], [0, 0, 1, 1], [], []>} : vector<16x36xf32>, vector<36x36xf32>, vector<16x36xf32> -> vector<16x36xf32>
    %c80 = arith.constant 80 : index
    %c0_31 = arith.constant 0 : index
    %38 = vector.load %arg18[%c80, %c0_31] : memref<144x36xf32, #tpu.memory_space<vmem>>, vector<16x36xf32>
    tpu.vector_store %arg18[%c80, %c0_31], %37 {strides = array<i32>} : memref<144x36xf32, #tpu.memory_space<vmem>>, vector<16x36xf32>,
    %c6 = arith.constant 6 : index
    %c0_32 = arith.constant 0 : index
    %c0_33 = arith.constant 0 : index
    %39 = vector.load %arg4[%c6, %c0_32, %c0_33] : memref<9x36x36xf32, #tpu.memory_space<vmem>>, vector<1x36x36xf32>
    %40 = vector.shape_cast %39 : vector<1x36x36xf32> to vector<36x36xf32>
    %cst_34 = arith.constant dense<0.000000e+00> : vector<16x36xf32>
    %41 = tpu.matmul %14, %40, %cst_34 {dimension_numbers = #tpu.dot_dimension_numbers<[1], [0], [0], [1], [0, 0, 1, 1], [], []>} : vector<16x36xf32>, vector<36x36xf32>, vector<16x36xf32> -> vector<16x36xf32>
    %c96 = arith.constant 96 : index
    %c0_35 = arith.constant 0 : index
    %42 = vector.load %arg18[%c96, %c0_35] : memref<144x36xf32, #tpu.memory_space<vmem>>, vector<16x36xf32>
    tpu.vector_store %arg18[%c96, %c0_35], %41 {strides = array<i32>} : memref<144x36xf32, #tpu.memory_space<vmem>>, vector<16x36xf32>,
    %c7 = arith.constant 7 : index
    %c0_36 = arith.constant 0 : index
    %c0_37 = arith.constant 0 : index
    %43 = vector.load %arg4[%c7, %c0_36, %c0_37] : memref<9x36x36xf32, #tpu.memory_space<vmem>>, vector<1x36x36xf32>
    %44 = vector.shape_cast %43 : vector<1x36x36xf32> to vector<36x36xf32>
    %cst_38 = arith.constant dense<0.000000e+00> : vector<16x36xf32>
    %45 = tpu.matmul %14, %44, %cst_38 {dimension_numbers = #tpu.dot_dimension_numbers<[1], [0], [0], [1], [0, 0, 1, 1], [], []>} : vector<16x36xf32>, vector<36x36xf32>, vector<16x36xf32> -> vector<16x36xf32>
    %c112 = arith.constant 112 : index
    %c0_39 = arith.constant 0 : index
    %46 = vector.load %arg18[%c112, %c0_39] : memref<144x36xf32, #tpu.memory_space<vmem>>, vector<16x36xf32>
    tpu.vector_store %arg18[%c112, %c0_39], %45 {strides = array<i32>} : memref<144x36xf32, #tpu.memory_space<vmem>>, vector<16x36xf32>,
    %c8 = arith.constant 8 : index
    %c0_40 = arith.constant 0 : index
    %c0_41 = arith.constant 0 : index
    %47 = vector.load %arg4[%c8, %c0_40, %c0_41] : memref<9x36x36xf32, #tpu.memory_space<vmem>>, vector<1x36x36xf32>
    %48 = vector.shape_cast %47 : vector<1x36x36xf32> to vector<36x36xf32>
    %cst_42 = arith.constant dense<0.000000e+00> : vector<16x36xf32>
    %49 = tpu.matmul %14, %48, %cst_42 {dimension_numbers = #tpu.dot_dimension_numbers<[1], [0], [0], [1], [0, 0, 1, 1], [], []>} : vector<16x36xf32>, vector<36x36xf32>, vector<16x36xf32> -> vector<16x36xf32>
    %c128 = arith.constant 128 : index
    %c0_43 = arith.constant 0 : index
    %50 = vector.load %arg18[%c128, %c0_43] : memref<144x36xf32, #tpu.memory_space<vmem>>, vector<16x36xf32>
    tpu.vector_store %arg18[%c128, %c0_43], %49 {strides = array<i32>} : memref<144x36xf32, #tpu.memory_space<vmem>>, vector<16x36xf32>,
    %c0_44 = arith.constant 0 : index
    %c0_45 = arith.constant 0 : index
    %51 = vector.load %arg5[%c0_44, %c0_45] : memref<32x144xf32, #tpu.memory_space<vmem>>, vector<32x144xf32>
    %c0_46 = arith.constant 0 : index
    %c0_47 = arith.constant 0 : index
    %52 = vector.load %arg18[%c0_46, %c0_47] : memref<144x36xf32, #tpu.memory_space<vmem>>, vector<144x36xf32>
    %cst_48 = arith.constant dense<0.000000e+00> : vector<32x36xf32>
    %53 = tpu.matmul %51, %52, %cst_48 {dimension_numbers = #tpu.dot_dimension_numbers<[1], [0], [0], [1], [0, 0, 1, 1], [], []>} : vector<32x144xf32>, vector<144x36xf32>, vector<32x36xf32> -> vector<32x36xf32>
    %c0_49 = arith.constant 0 : index
    %c0_50 = arith.constant 0 : index
    %54 = vector.load %arg6[%c0_49, %c0_50] : memref<32x1xf32, #tpu.memory_space<vmem>>, vector<32x1xf32>
    %55 = vector.broadcast %54 : vector<32x1xf32> to vector<32x36xf32>
    %56 = arith.addf %53, %55 : vector<32x36xf32>
    %c0_51 = arith.constant 0 : index
    %c0_52 = arith.constant 0 : index
    %c0_53 = arith.constant 0 : index
    %57 = vector.load %arg7[%c0_51, %c0_52, %c0_53] : memref<4x36x9xf32, #tpu.memory_space<vmem>>, vector<1x36x9xf32>
    %58 = vector.shape_cast %57 : vector<1x36x9xf32> to vector<36x9xf32>
    %cst_54 = arith.constant dense<0.000000e+00> : vector<32x9xf32>
    %59 = tpu.matmul %56, %58, %cst_54 {dimension_numbers = #tpu.dot_dimension_numbers<[1], [0], [0], [1], [0, 0, 1, 1], [], []>} : vector<32x36xf32>, vector<36x9xf32>, vector<32x9xf32> -> vector<32x9xf32>
    %c1_55 = arith.constant 1 : index
    %c0_56 = arith.constant 0 : index
    %c0_57 = arith.constant 0 : index
    %60 = vector.load %arg7[%c1_55, %c0_56, %c0_57] : memref<4x36x9xf32, #tpu.memory_space<vmem>>, vector<1x36x9xf32>
    %61 = vector.shape_cast %60 : vector<1x36x9xf32> to vector<36x9xf32>
    %cst_58 = arith.constant dense<0.000000e+00> : vector<32x9xf32>
    %62 = tpu.matmul %56, %61, %cst_58 {dimension_numbers = #tpu.dot_dimension_numbers<[1], [0], [0], [1], [0, 0, 1, 1], [], []>} : vector<32x36xf32>, vector<36x9xf32>, vector<32x9xf32> -> vector<32x9xf32>
    %c2_59 = arith.constant 2 : index
    %c0_60 = arith.constant 0 : index
    %c0_61 = arith.constant 0 : index
    %63 = vector.load %arg7[%c2_59, %c0_60, %c0_61] : memref<4x36x9xf32, #tpu.memory_space<vmem>>, vector<1x36x9xf32>
    %64 = vector.shape_cast %63 : vector<1x36x9xf32> to vector<36x9xf32>
    %cst_62 = arith.constant dense<0.000000e+00> : vector<32x9xf32>
    %65 = tpu.matmul %56, %64, %cst_62 {dimension_numbers = #tpu.dot_dimension_numbers<[1], [0], [0], [1], [0, 0, 1, 1], [], []>} : vector<32x36xf32>, vector<36x9xf32>, vector<32x9xf32> -> vector<32x9xf32>
    %c3_63 = arith.constant 3 : index
    %c0_64 = arith.constant 0 : index
    %c0_65 = arith.constant 0 : index
    %66 = vector.load %arg7[%c3_63, %c0_64, %c0_65] : memref<4x36x9xf32, #tpu.memory_space<vmem>>, vector<1x36x9xf32>
    %67 = vector.shape_cast %66 : vector<1x36x9xf32> to vector<36x9xf32>
    %cst_66 = arith.constant dense<0.000000e+00> : vector<32x9xf32>
    %68 = tpu.matmul %56, %67, %cst_66 {dimension_numbers = #tpu.dot_dimension_numbers<[1], [0], [0], [1], [0, 0, 1, 1], [], []>} : vector<32x36xf32>, vector<36x9xf32>, vector<32x9xf32> -> vector<32x9xf32>
    %69 = arith.maximumf %59, %62 : vector<32x9xf32>
    %70 = arith.maximumf %65, %68 : vector<32x9xf32>
    %71 = arith.maximumf %69, %70 : vector<32x9xf32>
    %cst_67 = arith.constant 0.000000e+00 : f32
    %72 = vector.broadcast %cst_67 : f32 to vector<32x9xf32>
    %73 = arith.maximumf %71, %72 : vector<32x9xf32>
    %c0_68 = arith.constant 0 : index
    %c0_69 = arith.constant 0 : index
    %74 = vector.load %arg8[%c0_68, %c0_69] : memref<9x288xf32, #tpu.memory_space<vmem>>, vector<9x288xf32>
    %cst_70 = arith.constant dense<0.000000e+00> : vector<32x288xf32>
    %75 = tpu.matmul %73, %74, %cst_70 {dimension_numbers = #tpu.dot_dimension_numbers<[1], [0], [0], [1], [0, 0, 1, 1], [], []>} : vector<32x9xf32>, vector<9x288xf32>, vector<32x288xf32> -> vector<32x288xf32>
    %c0_71 = arith.constant 0 : index
    %c0_72 = arith.constant 0 : index
    %76 = vector.load %arg9[%c0_71, %c0_72] : memref<32x288xf32, #tpu.memory_space<vmem>>, vector<32x288xf32>
    %77 = arith.mulf %75, %76 : vector<32x288xf32>
    %cst_73 = arith.constant dense<0.000000e+00> : vector<288xf32>
    %78 = vector.multi_reduction <add>, %77, %cst_73 [0] : vector<32x288xf32> to vector<288xf32>
    %79 = vector.shape_cast %78 : vector<288xf32> to vector<1x288xf32>
    %c0_74 = arith.constant 0 : index
    %c0_75 = arith.constant 0 : index
    %80 = vector.load %arg10[%c0_74, %c0_75] : memref<288x32xf32, #tpu.memory_space<vmem>>, vector<288x32xf32>
    %cst_76 = arith.constant dense<0.000000e+00> : vector<1x32xf32>
    %81 = tpu.matmul %79, %80, %cst_76 {dimension_numbers = #tpu.dot_dimension_numbers<[1], [0], [0], [1], [0, 0, 1, 1], [], []>} : vector<1x288xf32>, vector<288x32xf32>, vector<1x32xf32> -> vector<1x32xf32>
    %c0_77 = arith.constant 0 : index
    %c0_78 = arith.constant 0 : index
    %82 = vector.load %arg1[%c0_77, %c0_78] : memref<1x8xf32, #tpu.memory_space<vmem>>, vector<1x8xf32>
    %c0_79 = arith.constant 0 : index
    %c0_80 = arith.constant 0 : index
    %83 = vector.load %arg11[%c0_79, %c0_80] : memref<8x32xf32, #tpu.memory_space<vmem>>, vector<8x32xf32>
    %cst_81 = arith.constant dense<0.000000e+00> : vector<1x32xf32>
    %84 = tpu.matmul %82, %83, %cst_81 {dimension_numbers = #tpu.dot_dimension_numbers<[1], [0], [0], [1], [0, 0, 1, 1], [], []>} : vector<1x8xf32>, vector<8x32xf32>, vector<1x32xf32> -> vector<1x32xf32>
    %85 = arith.addf %81, %84 : vector<1x32xf32>
    %c0_82 = arith.constant 0 : index
    %c0_83 = arith.constant 0 : index
    %86 = vector.load %arg12[%c0_82, %c0_83] : memref<1x32xf32, #tpu.memory_space<vmem>>, vector<1x32xf32>
    %87 = arith.addf %85, %86 : vector<1x32xf32>
    %c0_84 = arith.constant 0 : index
    %c0_85 = arith.constant 0 : index
    %88 = vector.load %arg13[%c0_84, %c0_85] : memref<32x32xf32, #tpu.memory_space<vmem>>, vector<32x32xf32>
    %cst_86 = arith.constant dense<0.000000e+00> : vector<1x32xf32>
    %89 = tpu.matmul %87, %88, %cst_86 {dimension_numbers = #tpu.dot_dimension_numbers<[1], [0], [0], [1], [0, 0, 1, 1], [], []>} : vector<1x32xf32>, vector<32x32xf32>, vector<1x32xf32> -> vector<1x32xf32>
    %c0_87 = arith.constant 0 : index
    %c0_88 = arith.constant 0 : index
    %90 = vector.load %arg14[%c0_87, %c0_88] : memref<1x32xf32, #tpu.memory_space<vmem>>, vector<1x32xf32>
    %91 = arith.addf %89, %90 : vector<1x32xf32>
    %92 = math.tanh %91 : vector<1x32xf32>
    %c0_89 = arith.constant 0 : index
    %c0_90 = arith.constant 0 : index
    %93 = vector.load %arg15[%c0_89, %c0_90] : memref<32x8xf32, #tpu.memory_space<vmem>>, vector<32x8xf32>
    %cst_91 = arith.constant dense<0.000000e+00> : vector<1x8xf32>
    %94 = tpu.matmul %92, %93, %cst_91 {dimension_numbers = #tpu.dot_dimension_numbers<[1], [0], [0], [1], [0, 0, 1, 1], [], []>} : vector<1x32xf32>, vector<32x8xf32>, vector<1x8xf32> -> vector<1x8xf32>
    %c0_92 = arith.constant 0 : index
    %c0_93 = arith.constant 0 : index
    %95 = vector.load %arg16[%c0_92, %c0_93] : memref<1x8xf32, #tpu.memory_space<vmem>>, vector<1x8xf32>
    %96 = arith.addf %94, %95 : vector<1x8xf32>
    %c0_94 = arith.constant 0 : index
    %c0_95 = arith.constant 0 : index
    %97 = vector.load %arg17[%c0_94, %c0_95] : memref<1x8xf32, #tpu.memory_space<vmem>>, vector<1x8xf32>
    tpu.vector_store %arg17[%c0_94, %c0_95], %96 {strides = array<i32>} : memref<1x8xf32, #tpu.memory_space<vmem>>, vector<1x8xf32>,
    return
  }
}

</mosaic_0001>

<bundles_post_ra>
// kernel: torch_cnn_forward.1
= control target key start
LH: loop header
LB: loop body
LE: loop exit
PB: predicated region body
PF: predicated region fallthrough
CT: control target
= control target key end

     0   :  { %s3846_s0 = inlined_call_operand.vmem [shape: f32[100,36], index: 0, kind: input, shape index: {}]   ;;  %s3847_s1 = inlined_call_operand.vmem [shape: f32[1,8], index: 1, kind: input, shape index: {}]   ;;  %s3848_s2 = inlined_call_operand.vmem [shape: f32[64,100], index: 2, kind: input, shape index: {}]   ;;  %s3849_s3 = inlined_call_operand.vmem [shape: f32[16,1], index: 3, kind: input, shape index: {}]   ;;  %s3850_s4 = inlined_call_operand.vmem [shape: f32[9,36,36], index: 4, kind: input, shape index: {}]   ;;  %s3851_s5 = inlined_call_operand.vmem [shape: f32[32,144], index: 5, kind: input, shape index: {}]   ;;  %s3852_s6 = inlined_call_operand.vmem [shape: f32[32,1], index: 6, kind: input, shape index: {}]   ;;  %s3853_s7 = inlined_call_operand.vmem [shape: f32[4,36,9], index: 7, kind: input, shape index: {}]   ;;  %s3854_s8 = inlined_call_operand.vmem [shape: f32[9,288], index: 8, kind: input, shape index: {}]   ;;  %s3855_s9 = inlined_call_operand.vmem [shape: f32[32,288], index: 9, kind: input, shape index: {}]   ;;  %s3856_s10 = inlined_call_operand.vmem [shape: f32[288,32], index: 10, kind: input, shape index: {}]   ;;  %s3857_s11 = inlined_call_operand.vmem [shape: f32[8,32], index: 11, kind: input, shape index: {}]   ;;  %s3858_s12 = inlined_call_operand.vmem [shape: f32[1,32], index: 12, kind: input, shape index: {}]   ;;  %s3859_s13 = inlined_call_operand.vmem [shape: f32[32,32], index: 13, kind: input, shape index: {}]   ;;  %s3860_s14 = inlined_call_operand.vmem [shape: f32[1,32], index: 14, kind: input, shape index: {}]   ;;  %s3861_s15 = inlined_call_operand.vmem [shape: f32[32,8], index: 15, kind: input, shape index: {}]   ;;  %s3862_s16 = inlined_call_operand.vmem [shape: f32[1,8], index: 16, kind: input, shape index: {}]   ;;  %s3863_s17 = inlined_call_operand.hbm [shape: f32[1,8], index: 17, kind: output, shape index: {}]  }
   0x1   :  { %3865 = sst [smem:[#allocation6_spill]] %s3846_s0 }
   0x2   :  { %3866 = sst [smem:[#allocation7_spill]] %s3847_s1 }
   0x3   :  { %s3867_s26 = sld [smem:[#allocation6_spill]]  ;;  %v3080_v5 = vmov 0   ;;  %vm78_vm0 = vcmask 818176   ;;  %v57_v9 = vld [vmem:[%s3848_s2] sm:$0xff] }
   0x4   :  { %3052 = vset.pattern.permute.xlu0 %v3080_v5  ;;  %3053 = vset.pattern.permute.xlu1 %v3080_v5  ;;  %v218_v13 = vld [vmem:[%s3849_s3] sm:$0xff] }
   0x5   :  { %2588 = vmatprep.mubr.msk.f32.mxu0 %vm78_vm0, %v57_v9  ;;  %222 = vperm.xlu0 %3052, %v218_v13  }
   0x9   :  { %v65_v0 = vld [vmem:[%s3867_s26] sm:$0xff]  ;;  %v66_v1 = vld [vmem:[%s3867_s26 + $0x8] sm:$0xff]  ;;  %v67_v2 = vld [vmem:[%s3867_s26 + $0x10] sm:$0xff] }
   0xa   :  { %v2829_v3 = vpack.c.bf16 %v66_v1, %v65_v0  ;;  %v68_v4 = vld [vmem:[%s3867_s26 + $0x18] sm:$0xff]  ;;  %v69_v7 = vld [vmem:[%s3867_s26 + $0x20] sm:$0xff]  ;;  %v70_v8 = vld [vmem:[%s3867_s26 + $0x28] sm:$0xff] }
   0xb   :  { %v2833_v6 = vpack.c.bf16 %v68_v4, %v67_v2  ;;  %v2837_v10 = vpack.c.bf16 %v70_v8, %v69_v7  ;;  %v71_v11 = vld [vmem:[%s3867_s26 + $0x30] sm:$0xff]  ;;  %v72_v12 = vld [vmem:[%s3867_s26 + $0x38] sm:$0xff] }
   0xc   :  { %2830 = vmatprep.subr.bf16.mxu0 %v2829_v3 }
   0xd   :  { %2832 = vmatpush3.bf16.msra.mxu0 %v2829_v3 }
   0xe   :  { %2834 = vmatprep.subr.bf16.mxu0 %v2833_v6 }
  0x11   :  { %2836 = vmatpush3.bf16.msra.mxu0 %v2833_v6 }
  0x12   :  { %22 = vsyncpa [#allocation4], 0  ;;  %2838 = vmatprep.subr.bf16.mxu0 %v2837_v10  ;;  %v2841_v14 = vpack.c.bf16 %v72_v12, %v71_v11  ;;  %v219_v15 = vld [vmem:[%s3849_s3 + $0x8] sm:$0xff]  ;;  %v73_v16 = vld [vmem:[%s3867_s26 + $0x40] sm:$0xff]  ;;  %vm103_vm1 = vcmask 1043456   ;;  %vm239_vm2 = vcmask 293888  }
  0x13   :  { %v74_v17 = vld [vmem:[%s3867_s26 + $0x48] sm:$0xff]  ;;  %227 = vperm.xlu0 %3052, %v219_v15   ;;  %v1042_v19 = vld [vmem:[%s3852_s6 + $0x10] sm:$0xff]  ;;  %v76_v21 = vld [vmem:[%s3867_s26 + $0x58] sm:$0xff]  ;;  %vm1064_vm3 = vcmask 130048   ;;  %vm1584_vm4 = vcmask 1040384   ;;  %vm3082_vm5 = vmmov 1  }
  0x14   :  { %v2845_v18 = vpack.c.bf16 %v74_v17, %v73_v16  ;;  %v75_v20 = vld [vmem:[%s3867_s26 + $0x50] sm:$0xff]  ;;  %v77_v23 = vld [vmem:[%s3867_s26 + $0x60] sm:$0xf]  ;;  %v58_v24 = vld [vmem:[%s3848_s2 + $0x8] sm:$0xff]  ;;  %vm1571_vm7 = vcmask 72704   ;;  %vm3084_vm8 = vmmov 0  }
  0x15   :  { %2840 = vmatpush3.bf16.msra.mxu0 %v2837_v10  ;;  %v2849_v22 = vpack.c.bf16 %v76_v21, %v75_v20  ;;  %v59_v25 = vld [vmem:[%s3848_s2 + $0x10] sm:$0xff]  ;;  %v60_v26 = vld [vmem:[%s3848_s2 + $0x18] sm:$0xff]  ;;  %v61_v27 = vld [vmem:[%s3848_s2 + $0x20] sm:$0xff]  ;;  %s3868_s26 = sld [smem:[#allocation7_spill]]  ;;  %vm1862_vm9 = vcmask 64512   ;;  %vm1810_vm10 = vcmask 261120  }
  0x16   :  { %2842 = vmatprep.subr.bf16.mxu0 %v2841_v14  ;;  %v62_v28 = vld [vmem:[%s3848_s2 + $0x28] sm:$0xff]  ;;  %v63_v29 = vld [vmem:[%s3848_s2 + $0x30] sm:$0xff]  ;;  %v64_v30 = vld [vmem:[%s3848_s2 + $0x38] sm:$0xff]  ;;  %vm2238_vm11 = vcmask 57344  }
  0x17   :  { %1056 = vperm.xlu0 %3052, %v1042_v19   ;;  %v234_v31 = vld [vmem:[%s3850_s4] sm:$0xff]  ;;  %v235_v32 = vld [vmem:[%s3850_s4 + $0x8] sm:$0xff]  ;;  %v236_v37 = vld [vmem:[%s3850_s4 + $0x10] sm:$0xff] }
  0x18   :  { %v2290_v33 = vld [vmem:[%s3850_s4 + $0xa0] sm:$0xff]  ;;  %v2853_v34 = vpack.c.bf16 %v235_v32, %v234_v31  ;;  %v2291_v35 = vld [vmem:[%s3850_s4 + $0xa8] sm:$0xff]  ;;  %v237_v38 = vld [vmem:[%s3850_s4 + $0x18] sm:$0xff] }
  0x19   :  { %2844 = vmatpush3.bf16.msra.mxu0 %v2841_v14  ;;  %v2885_v36 = vpack.c.bf16 %v2291_v35, %v2290_v33  ;;  %v2292_v39 = vld [vmem:[%s3850_s4 + $0xb0] sm:$0xff]  ;;  %v2857_v40 = vpack.c.bf16 %v237_v38, %v236_v37  ;;  %v2293_v41 = vld [vmem:[%s3850_s4 + $0xb8] sm:$0xff]  ;;  %v238_v43 = vld [vmem:[%s3850_s4 + $0x20] sm:$0xf] }
  0x1a   :  { %2846 = vmatprep.subr.bf16.mxu0 %v2845_v18  ;;  %2854 = vmatprep.subr.bf16.mxu1 %v2853_v34  ;;  %v2889_v42 = vpack.c.bf16 %v2293_v41, %v2292_v39  ;;  %v2294_v44 = vld [vmem:[%s3850_s4 + $0xc0] sm:$0xf]  ;;  %v2266_v45 = vld [vmem:[%s3850_s4 + $0x28] sm:$0xff]  ;;  %v2267_v46 = vld [vmem:[%s3850_s4 + $0x30] sm:$0xff] }
  0x1b   :  { %2856 = vmatpush3.bf16.msra.mxu1 %v2853_v34  ;;  %v2306_v47 = vld [vmem:[%s3850_s4 + $0xf0] sm:$0xff]  ;;  %v2307_v48 = vld [vmem:[%s3850_s4 + $0xf8] sm:$0xff]  ;;  %v2861_v49 = vpack.c.bf16 %v2267_v46, %v2266_v45  ;;  %v2269_v6 = vld [vmem:[%s3850_s4 + $0x40] sm:$0xff] }
  0x1c   :  { %2858 = vmatprep.subr.bf16.mxu1 %v2857_v40  ;;  %v2901_v50 = vpack.c.bf16 %v2307_v48, %v2306_v47  ;;  %v2268_v5 = vld [vmem:[%s3850_s4 + $0x38] sm:$0xff]  ;;  %v2308_v7 = vld [vmem:[%s3850_s4 + $0x100] sm:$0xff]  ;;  %v2309_v8 = vld [vmem:[%s3850_s4 + $0x108] sm:$0xff] }
  0x1d   :  { %2848 = vmatpush3.bf16.msra.mxu0 %v2845_v18  ;;  %v2865_v11 = vpack.c.bf16 %v2269_v6, %v2268_v5  ;;  %v2905_v12 = vpack.c.bf16 %v2309_v8, %v2308_v7  ;;  %v2270_v13 = vld [vmem:[%s3850_s4 + $0x48] sm:$0xf]  ;;  %v2310_v14 = vld [vmem:[%s3850_s4 + $0x110] sm:$0xf]  ;;  %v2275_v16 = vld [vmem:[%s3850_s4 + $0x58] sm:$0xff] }
  0x1e   :  { %2850 = vmatprep.subr.bf16.mxu0 %v2849_v22  ;;  %v2274_v15 = vld [vmem:[%s3850_s4 + $0x50] sm:$0xff]  ;;  %v2322_v17 = vld [vmem:[%s3850_s4 + $0x140] sm:$0xff]  ;;  %v2323_v18 = vld [vmem:[%s3850_s4 + $0x148] sm:$0xff] }
  0x1f   :  { %2860 = vmatpush3.bf16.msra.mxu1 %v2857_v40  ;;  %v2869_v19 = vpack.c.bf16 %v2275_v16, %v2274_v15  ;;  %v2276_v20 = vld [vmem:[%s3850_s4 + $0x60] sm:$0xff]  ;;  %v2917_v21 = vpack.c.bf16 %v2323_v18, %v2322_v17  ;;  %v2284_v31 = vld [vmem:[%s3850_s4 + $0x88] sm:$0xff]  ;;  %v2285_v32 = vld [vmem:[%s3850_s4 + $0x90] sm:$0xff] }
  0x20   :  { %2608 = vmatprep.subr.msk.mxu1 %vm103_vm1, %v238_v43  ;;  %v2881_v34 = vpack.c.bf16 %v2285_v32, %v2284_v31  ;;  %v2286_v35 = vld [vmem:[%s3850_s4 + $0x98] sm:$0xf]  ;;  %v2299_v37 = vld [vmem:[%s3850_s4 + $0xd0] sm:$0xff]  ;;  %v2301_v39 = vld [vmem:[%s3850_s4 + $0xe0] sm:$0xff] }
  0x21   :  { %2852 = vmatpush3.bf16.msra.mxu0 %v2849_v22  ;;  %v2277_v22 = vld [vmem:[%s3850_s4 + $0x68] sm:$0xff]  ;;  %v2300_v38 = vld [vmem:[%s3850_s4 + $0xd8] sm:$0xff]  ;;  %v2317_v46 = vld [vmem:[%s3850_s4 + $0x130] sm:$0xff] }
  0x22   :  { %2586 = vmatprep.subr.msk.mxu0 %vm103_vm1, %v77_v23  ;;  %v2897_v41 = vpack.c.bf16 %v2301_v39, %v2300_v38  ;;  %v2316_v45 = vld [vmem:[%s3850_s4 + $0x128] sm:$0xff]  ;;  %v1014_v39 = vld [vmem:[%s3851_s5] sm:$0xff]  ;;  %vm2985_vm6 = vmpackc.low %vm1584_vm4, %vm3082_vm5 }
  0x23   :  { %2609 = vmatpush3.msk.msra.mxu1 %vm103_vm1, %v238_v43  ;;  %v2314_v43 = vld [vmem:[%s3850_s4 + $0x118] sm:$0xff]  ;;  %v2913_v48 = vpack.c.bf16 %v2317_v46, %v2316_v45  ;;  %v1020_v45 = vld [vmem:[%s3851_s5 + $0x30] sm:$0xff] }
  0x24   :  { %2862 = vmatprep.subr.bf16.mxu1 %v2861_v49  ;;  %v1164_v46 = vld [vmem:[%s3853_s7 + $0x10] sm:$0xff] }
  0x25   :  { %2587 = vmatpush3.msk.msra.mxu0 %vm103_vm1, %v77_v23  ;;  %v2324_v23 = vld [vmem:[%s3850_s4 + $0x150] sm:$0xff] }
  0x26   :  { %2589 = vmatmul.mubr.msk.f32.vlgmr.msra.gmra.mrb[0].mxu0 %vm78_vm0, %v58_v24  ;;  %2886 = vmatprep.subr.bf16.mxu0 %v2885_v36  ;;  %v2325_v24 = vld [vmem:[%s3850_s4 + $0x158] sm:$0xff] }
  0x27   :  { %2591 = vmatprep.mubr.msk.f32.mxu0 %vm78_vm0, %v59_v25  ;;  %2888 = vmatpush3.bf16.msra.mxu0 %v2885_v36  ;;  %v2873_v25 = vpack.c.bf16 %v2277_v22, %v2276_v20  ;;  %v2298_v36 = vld [vmem:[%s3850_s4 + $0xc8] sm:$0xff] }
  0x28   :  { %2890 = vmatprep.subr.bf16.mxu0 %v2889_v42  ;;  %v2893_v40 = vpack.c.bf16 %v2299_v37, %v2298_v36 }
  0x2a   :  { %2592 = vmatmul.mubr.msk.f32.gmra.mrb[2].mxu0 %vm78_vm0, %v60_v26  ;;  %v2921_v26 = vpack.c.bf16 %v2325_v24, %v2324_v23 }
  0x2b   :  { %2594 = vmatprep.mubr.msk.f32.mxu0 %vm78_vm0, %v61_v27  ;;  %2892 = vmatpush3.bf16.msra.mxu0 %v2889_v42  ;;  %v2278_v27 = vld [vmem:[%s3850_s4 + $0x70] sm:$0xf]  ;;  %v2302_v42 = vld [vmem:[%s3850_s4 + $0xe8] sm:$0xf] }
  0x2c   :  { %2660 = vmatprep.subr.msk.mxu0 %vm103_vm1, %v2294_v44 }
  0x2e   :  { %2595 = vmatmul.mubr.msk.f32.gmra.mrb[4].mxu0 %vm78_vm0, %v62_v28  ;;  %v2326_v28 = vld [vmem:[%s3850_s4 + $0x160] sm:$0xf] }
  0x2f   :  { %2597 = vmatprep.mubr.msk.f32.mxu0 %vm78_vm0, %v63_v29  ;;  %2661 = vmatpush3.msk.msra.mxu0 %vm103_vm1, %v2294_v44  ;;  %v2282_v29 = vld [vmem:[%s3850_s4 + $0x78] sm:$0xff]  ;;  %v2315_v44 = vld [vmem:[%s3850_s4 + $0x120] sm:$0xff] }
  0x30   :  { %2902 = vmatprep.subr.bf16.mxu0 %v2901_v50  ;;  %v2909_v47 = vpack.c.bf16 %v2315_v44, %v2314_v43  ;;  %v1018_v43 = vld [vmem:[%s3851_s5 + $0x20] sm:$0xff]  ;;  %v1021_v44 = vld [vmem:[%s3851_s5 + $0x38] sm:$0xff] }
  0x32   :  { %2598 = vmatmul.mubr.msk.f32.gmra.mrb[6].mxu0 %vm78_vm0, %v64_v30  ;;  %v2283_v30 = vld [vmem:[%s3850_s4 + $0x80] sm:$0xff] }
  0x33   :  { %v2877_v33 = vpack.c.bf16 %v2283_v30, %v2282_v29 }
  0x84   :  { %v223_v59 = vpop.permute.xlu0 %222 }
  0x92   :  { %v228_v1 = vpop.permute.xlu0 %227 }
  0xf9   :  { %v2590_v51 = vpop.f32.mrb[0].mxu0 }
  0xfa   :  { %v173_v52 = vpop.f32.mrb[1].mxu0 }
  0xfd   :  { %v2593_v53 = vpop.f32.mrb[2].mxu0 }
  0xfe   :  { %v213_v54 = vmax.f32 %v2590_v51, %v2593_v53  ;;  %v183_v55 = vpop.f32.mrb[3].mxu0  ;;  %v1015_v51 = vld [vmem:[%s3851_s5 + $0x8] sm:$0xff]  ;;  %v1162_v53 = vld [vmem:[%s3853_s7] sm:$0xff] }
  0xff   :  { %v212_v56 = vmax.f32 %v173_v52, %v183_v55  ;;  %v1040_v52 = vld [vmem:[%s3852_s6] sm:$0xff]  ;;  %v1041_v55 = vld [vmem:[%s3852_s6 + $0x8] sm:$0xff] }
 0x100   :  { %1046 = vperm.xlu1 %3053, %v1040_v52   ;;  %v2340_v52 = vld [vmem:[%s3853_s7 + $0x30] sm:$0xff] }
 0x101   :  { %v2596_v57 = vpop.f32.mrb[4].mxu0 }
 0x102   :  { %v193_v58 = vpop.f32.mrb[5].mxu0 }
 0x104   :  { %1051 = vperm.xlu1 %3053, %v1041_v55  }
 0x105   :  { %v2599_v60 = vpop.f32.mrb[6].mxu0 }
 0x106   :  { %v215_v61 = vmax.f32 %v2596_v57, %v2599_v60  ;;  %v203_v62 = vpop.f32.mrb[7].mxu0  ;;  %v1043_v57 = vld [vmem:[%s3852_s6 + $0x18] sm:$0xff] }
 0x107   :  { %v214_v63 = vmax.f32 %v193_v58, %v203_v62 }
 0x108   :  { %v217_v0 = vmax.f32 %v213_v54, %v215_v61  ;;  %v1163_v54 = vld [vmem:[%s3853_s7 + $0x8] sm:$0xff]  ;;  %1061 = vperm.xlu1 %3053, %v1043_v57  }
 0x109   :  { %v216_v2 = vmax.f32 %v212_v56, %v214_v63  ;;  %v2952_v56 = vpack.c.bf16 %v1163_v54, %v1162_v53 }
 0x10a   :  { %v231_v3 = vadd.f32 %v228_v1, %v217_v0 }
 0x10b   :  { %v230_v4 = vadd.f32 %v223_v59, %v216_v2 }
 0x10c   :  { %v3318_v10 = vmax.f32 %v231_v3, 0.0 }
 0x10d   :  { %v3316_v9 = vmax.f32 %v230_v4, 0.0 }
 0x10f   :  { %2610 = vmatprep.mubr.msk.f32.mxu1 %vm239_vm2, %v3316_v9  ;;  %2662 = vmatprep.mubr.msk.f32.mxu0 %vm239_vm2, %v3316_v9 }
 0x110   :  { %2611 = vmatmul.mubr.msk.f32.vlgmr.msra.gmra.mrb[0].mxu1 %vm239_vm2, %v3318_v10  ;;  %2663 = vmatmul.mubr.msk.f32.vlgmr.msra.gmra.mrb[8].mxu0 %vm239_vm2, %v3318_v10 }
 0x111   :  { %2864 = vmatpush3.bf16.msra.mxu1 %v2861_v49  ;;  %2904 = vmatpush3.bf16.msra.mxu0 %v2901_v50  ;;  %v2318_v49 = vld [vmem:[%s3850_s4 + $0x138] sm:$0xf]  ;;  %v3081_v50 = vmov 0.0|0.0  }
 0x112   :  { %2623 = vmatprep.mubr.msk.f32.mxu1 %vm239_vm2, %v3316_v9  ;;  %2688 = vmatprep.mubr.msk.f32.mxu0 %vm239_vm2, %v3316_v9 }
 0x113   :  { %2866 = vmatprep.subr.bf16.mxu1 %v2865_v11  ;;  %2906 = vmatprep.subr.bf16.mxu0 %v2905_v12 }
 0x115   :  { %2868 = vmatpush3.bf16.msra.mxu1 %v2865_v11  ;;  %2908 = vmatpush3.bf16.msra.mxu0 %v2905_v12 }
 0x116   :  { %2621 = vmatprep.subr.msk.mxu1 %vm103_vm1, %v2270_v13  ;;  %2686 = vmatprep.subr.msk.mxu0 %vm103_vm1, %v2310_v14 }
 0x119   :  { %2622 = vmatpush3.msk.msra.mxu1 %vm103_vm1, %v2270_v13  ;;  %2687 = vmatpush3.msk.msra.mxu0 %vm103_vm1, %v2310_v14 }
 0x11a   :  { %2624 = vmatmul.mubr.msk.f32.vlgmr.msra.gmra.mrb[2].mxu1 %vm239_vm2, %v3318_v10  ;;  %2870 = vmatprep.subr.bf16.mxu1 %v2869_v19 }
 0x11b   :  { %2689 = vmatmul.mubr.msk.f32.vlgmr.msra.gmra.mrb[10].mxu0 %vm239_vm2, %v3318_v10  ;;  %2918 = vmatprep.subr.bf16.mxu0 %v2917_v21 }
 0x11c   :  { %2872 = vmatpush3.bf16.msra.mxu1 %v2869_v19  ;;  %2636 = vmatprep.mubr.msk.f32.mxu1 %vm239_vm2, %v3316_v9 }
 0x11d   :  { %2920 = vmatpush3.bf16.msra.mxu0 %v2917_v21  ;;  %2714 = vmatprep.mubr.msk.f32.mxu0 %vm239_vm2, %v3316_v9 }
 0x11e   :  { %2874 = vmatprep.subr.bf16.mxu1 %v2873_v25  ;;  %2922 = vmatprep.subr.bf16.mxu0 %v2921_v26 }
 0x120   :  { %2876 = vmatpush3.bf16.msra.mxu1 %v2873_v25 }
 0x121   :  { %2924 = vmatpush3.bf16.msra.mxu0 %v2921_v26  ;;  %2634 = vmatprep.subr.msk.mxu1 %vm103_vm1, %v2278_v27 }
 0x122   :  { %2712 = vmatprep.subr.msk.mxu0 %vm103_vm1, %v2326_v28 }
 0x124   :  { %2635 = vmatpush3.msk.msra.mxu1 %vm103_vm1, %v2278_v27 }
 0x125   :  { %2713 = vmatpush3.msk.msra.mxu0 %vm103_vm1, %v2326_v28  ;;  %2637 = vmatmul.mubr.msk.f32.vlgmr.msra.gmra.mrb[4].mxu1 %vm239_vm2, %v3318_v10 }
 0x126   :  { %2878 = vmatprep.subr.bf16.mxu1 %v2877_v33  ;;  %2715 = vmatmul.mubr.msk.f32.vlgmr.msra.gmra.mrb[12].mxu0 %vm239_vm2, %v3318_v10 }
 0x127   :  { %2880 = vmatpush3.bf16.msra.mxu1 %v2877_v33  ;;  %2649 = vmatprep.mubr.msk.f32.mxu1 %vm239_vm2, %v3316_v9 }
 0x128   :  { %2882 = vmatprep.subr.bf16.mxu1 %v2881_v34  ;;  %2953 = vmatprep.subr.bf16.mxu0 %v2952_v56 }
 0x129   :  { %2955 = vmatpush3.bf16.msra.mxu0 %v2952_v56 }
 0x12b   :  { %2884 = vmatpush3.bf16.msra.mxu1 %v2881_v34 }
 0x12c   :  { %2647 = vmatprep.subr.msk.mxu1 %vm103_vm1, %v2286_v35 }
 0x12f   :  { %2648 = vmatpush3.msk.msra.mxu1 %vm103_vm1, %v2286_v35 }
 0x130   :  { %2650 = vmatmul.mubr.msk.f32.vlgmr.msra.gmra.mrb[6].mxu1 %vm239_vm2, %v3318_v10  ;;  %2894 = vmatprep.subr.bf16.mxu1 %v2893_v40 }
 0x131   :  { %2896 = vmatpush3.bf16.msra.mxu1 %v2893_v40  ;;  %2675 = vmatprep.mubr.msk.f32.mxu1 %vm239_vm2, %v3316_v9  ;;  %v1017_v40 = vld [vmem:[%s3851_s5 + $0x18] sm:$0xff] }
 0x132   :  { %2898 = vmatprep.subr.bf16.mxu1 %v2897_v41 }
 0x135   :  { %2900 = vmatpush3.bf16.msra.mxu1 %v2897_v41  ;;  %v1016_v41 = vld [vmem:[%s3851_s5 + $0x10] sm:$0xff] }
 0x136   :  { %2673 = vmatprep.subr.msk.mxu1 %vm103_vm1, %v2302_v42 }
 0x139   :  { %2674 = vmatpush3.msk.msra.mxu1 %vm103_vm1, %v2302_v42  ;;  %v1019_v42 = vld [vmem:[%s3851_s5 + $0x28] sm:$0xff] }
 0x13a   :  { %2676 = vmatmul.mubr.msk.f32.vlgmr.msra.gmra.mrb[8].mxu1 %vm239_vm2, %v3318_v10  ;;  %2910 = vmatprep.subr.bf16.mxu1 %v2909_v47 }
 0x13b   :  { %2912 = vmatpush3.bf16.msra.mxu1 %v2909_v47  ;;  %2701 = vmatprep.mubr.msk.f32.mxu1 %vm239_vm2, %v3316_v9  ;;  %v1165_v47 = vld [vmem:[%s3853_s7 + $0x18] sm:$0xff] }
 0x13c   :  { %2914 = vmatprep.subr.bf16.mxu1 %v2913_v48 }
 0x13f   :  { %2916 = vmatpush3.bf16.msra.mxu1 %v2913_v48  ;;  %v2956_v48 = vpack.c.bf16 %v1165_v47, %v1164_v46 }
 0x140   :  { %2699 = vmatprep.subr.msk.mxu1 %vm103_vm1, %v2318_v49 }
 0x141   :  { %2957 = vmatprep.subr.bf16.mxu0 %v2956_v48 }
 0x142   :  { %2959 = vmatpush3.bf16.msra.mxu0 %v2956_v48 }
 0x143   :  { %2700 = vmatpush3.msk.msra.mxu1 %vm103_vm1, %v2318_v49  ;;  %v1166_v49 = vld [vmem:[%s3853_s7 + $0x20] sm:$0xf] }
 0x144   :  { %2702 = vmatmul.mubr.msk.f32.vlgmr.msra.gmra.mrb[10].mxu1 %vm239_vm2, %v3318_v10  ;;  %2925 = vmatprep.subr.bf16.mxu1 %v3081_v50 }
 0x145   :  { %2330 = vmatprep.mubr.msk.f32.mxu1 %vm1064_vm3, %v1015_v51  ;;  %2725 = vmatprep.subr.msk.mxu0 %vm103_vm1, %v1166_v49  ;;  %v2339_v51 = vld [vmem:[%s3853_s7 + $0x28] sm:$0xff] }
 0x146   :  { %2726 = vmatpush3.msk.msra.mxu0 %vm103_vm1, %v1166_v49  ;;  %v2960_v53 = vpack.c.bf16 %v2340_v52, %v2339_v51 }
 0x148   :  { %2961 = vmatprep.subr.bf16.mxu0 %v2960_v53 }
 0x17f   :  { %v1047_v54 = vpop.permute.xlu1 %1046 }
 0x1e3   :  { %v2612_v58 = vpop.f32.mrb[0].mxu1  ;;  %v2664_v59 = vpop.f32.mrb[8].mxu0 }
 0x1e4   :  { %325 = vst.msk [vmem:[#allocation2 + $0x8] sm:$0xff] %vm239_vm2, %v2612_v58  ;;  %669 = vst.msk [vmem:[#allocation2 + $0x48] sm:$0xff] %vm239_vm2, %v2664_v59  ;;  %v315_v60 = vpop.f32.mrb[1].mxu1  ;;  %v659_v61 = vpop.f32.mrb[9].mxu0  ;;  %v2341_v58 = vld [vmem:[%s3853_s7 + $0x38] sm:$0xff]  ;;  %v2342_v59 = vld [vmem:[%s3853_s7 + $0x40] sm:$0xff] }
 0x1e5   :  { %324 = vst.msk [vmem:[#allocation2] sm:$0xff] %vm239_vm2, %v315_v60  ;;  %668 = vst.msk [vmem:[#allocation2 + $0x40] sm:$0xff] %vm239_vm2, %v659_v61  ;;  %v1052_v60 = vpop.permute.xlu1 %1051 }
 0x1eb   :  { %v1023_v62 = vld [vmem:[#allocation2 + $0x8] sm:$0xff] }
 0x1ec   :  { %v1022_v63 = vld [vmem:[#allocation2] sm:$0xff]  ;;  %v1031_v23 = vld [vmem:[#allocation2 + $0x48] sm:$0xff] }
 0x1ed   :  { %v2625_v0 = vpop.f32.mrb[2].mxu1  ;;  %v2926_v1 = vpack.c.bf16 %v1023_v62, %v1022_v63  ;;  %v1030_v22 = vld [vmem:[#allocation2 + $0x40] sm:$0xff] }
 0x1ee   :  { %411 = vst.msk [vmem:[#allocation2 + $0x18] sm:$0xff] %vm239_vm2, %v2625_v0  ;;  %v2690_v2 = vpop.f32.mrb[10].mxu0  ;;  %v401_v3 = vpop.f32.mrb[3].mxu1  ;;  %v2938_v24 = vpack.c.bf16 %v1031_v23, %v1030_v22  ;;  %v2964_v0 = vpack.c.bf16 %v2342_v59, %v2341_v58  ;;  %v2363_v23 = vld [vmem:[%s3853_s7 + $0x98] sm:$0xf] }
 0x1ef   :  { %841 = vst.msk [vmem:[#allocation2 + $0x68] sm:$0xff] %vm239_vm2, %v2690_v2  ;;  %410 = vst.msk [vmem:[#allocation2 + $0x10] sm:$0xff] %vm239_vm2, %v401_v3  ;;  %v831_v4 = vpop.f32.mrb[11].mxu0  ;;  %2927 = vmatpush1.bf16.msra.mxu1 %v2926_v1  ;;  %v1057_v1 = vpop.permute.xlu0 %1056 }
 0x1f0   :  { %840 = vst.msk [vmem:[#allocation2 + $0x60] sm:$0xff] %vm239_vm2, %v831_v4  ;;  %2928 = vmatprep.subr.bf16.mxu1 %v3081_v50 }
 0x1f5   :  { %v1025_v5 = vld [vmem:[#allocation2 + $0x18] sm:$0xff] }
 0x1f6   :  { %v1024_v6 = vld [vmem:[#allocation2 + $0x10] sm:$0xff]  ;;  %v1035_v31 = vld [vmem:[#allocation2 + $0x68] sm:$0xff] }
 0x1f7   :  { %v2929_v7 = vpack.c.bf16 %v1025_v5, %v1024_v6  ;;  %v1034_v30 = vld [vmem:[#allocation2 + $0x60] sm:$0xff]  ;;  %v2343_v5 = vld [vmem:[%s3853_s7 + $0x48] sm:$0xf]  ;;  %v2349_v6 = vld [vmem:[%s3853_s7 + $0x50] sm:$0xff] }
 0x1f8   :  { %v2638_v8 = vpop.f32.mrb[4].mxu1  ;;  %v2944_v32 = vpack.c.bf16 %v1035_v31, %v1034_v30  ;;  %v1570_v31 = vld [vmem:[%s3854_s8 + $0x28] sm:$0x1] }
 0x1f9   :  { %497 = vst.msk [vmem:[#allocation2 + $0x28] sm:$0xff] %vm239_vm2, %v2638_v8  ;;  %v2716_v9 = vpop.f32.mrb[12].mxu0  ;;  %v487_v10 = vpop.f32.mrb[5].mxu1  ;;  %2930 = vmatpush1.bf16.msra.mxu1 %v2929_v7  ;;  %v2350_v7 = vld [vmem:[%s3853_s7 + $0x58] sm:$0xff] }
 0x1fa   :  { %1013 = vst.msk [vmem:[#allocation2 + $0x88] sm:$0xff] %vm239_vm2, %v2716_v9  ;;  %496 = vst.msk [vmem:[#allocation2 + $0x20] sm:$0xff] %vm239_vm2, %v487_v10  ;;  %v1003_v11 = vpop.f32.mrb[13].mxu0  ;;  %2931 = vmatprep.subr.bf16.mxu1 %v3081_v50  ;;  %v1062_v8 = vpop.permute.xlu1 %1061 }
 0x1fb   :  { %1012 = vst.msk [vmem:[#allocation2 + $0x80] sm:$0xff] %vm239_vm2, %v1003_v11 }
 0x200   :  { %v1027_v12 = vld [vmem:[#allocation2 + $0x28] sm:$0xff] }
 0x201   :  { %v1026_v13 = vld [vmem:[#allocation2 + $0x20] sm:$0xff]  ;;  %v1039_v37 = vld [vmem:[#allocation2 + $0x88] sm:$0xff] }
 0x202   :  { %v2932_v14 = vpack.c.bf16 %v1027_v12, %v1026_v13  ;;  %v1038_v36 = vld [vmem:[#allocation2 + $0x80] sm:$0xff]  ;;  %v2968_v12 = vpack.c.bf16 %v2350_v7, %v2349_v6  ;;  %v1825_v7 = vld [vmem:[%s3856_s10 + $0x8] sm:$0xff] }
 0x203   :  { %v2651_v15 = vpop.f32.mrb[6].mxu1  ;;  %v2950_v38 = vpack.c.bf16 %v1039_v37, %v1038_v36  ;;  %v2351_v13 = vld [vmem:[%s3853_s7 + $0x60] sm:$0xff] }
 0x204   :  { %583 = vst.msk [vmem:[#allocation2 + $0x38] sm:$0xff] %vm239_vm2, %v2651_v15  ;;  %v573_v16 = vpop.f32.mrb[7].mxu1  ;;  %2933 = vmatpush1.bf16.msra.mxu1 %v2932_v14  ;;  %v2352_v14 = vld [vmem:[%s3853_s7 + $0x68] sm:$0xff]  ;;  %v1824_v6 = vld [vmem:[%s3856_s10] sm:$0xff] }
 0x205   :  { %582 = vst.msk [vmem:[#allocation2 + $0x30] sm:$0xff] %vm239_vm2, %v573_v16  ;;  %2934 = vmatprep.subr.bf16.mxu1 %v3081_v50  ;;  %v2972_v15 = vpack.c.bf16 %v2352_v14, %v2351_v13  ;;  %v2353_v16 = vld [vmem:[%s3853_s7 + $0x70] sm:$0xf]  ;;  %v1827_v13 = vld [vmem:[%s3856_s10 + $0x18] sm:$0xff] }
 0x20b   :  { %v1029_v17 = vld [vmem:[#allocation2 + $0x38] sm:$0xff] }
 0x20c   :  { %v1028_v18 = vld [vmem:[#allocation2 + $0x30] sm:$0xff] }
 0x20d   :  { %v2677_v19 = vpop.f32.mrb[8].mxu1  ;;  %v2935_v20 = vpack.c.bf16 %v1029_v17, %v1028_v18  ;;  %v2359_v17 = vld [vmem:[%s3853_s7 + $0x78] sm:$0xff]  ;;  %v2360_v18 = vld [vmem:[%s3853_s7 + $0x80] sm:$0xff] }
 0x20e   :  { %755 = vst.msk [vmem:[#allocation2 + $0x58] sm:$0xff] %vm239_vm2, %v2677_v19  ;;  %v745_v21 = vpop.f32.mrb[9].mxu1  ;;  %v2361_v19 = vld [vmem:[%s3853_s7 + $0x88] sm:$0xff] }
 0x20f   :  { %754 = vst.msk [vmem:[#allocation2 + $0x50] sm:$0xff] %vm239_vm2, %v745_v21  ;;  %2936 = vmatpush1.bf16.msra.mxu1 %v2935_v20  ;;  %v2362_v20 = vld [vmem:[%s3853_s7 + $0x90] sm:$0xff]  ;;  %v2976_v21 = vpack.c.bf16 %v2360_v18, %v2359_v17  ;;  %v1828_v18 = vld [vmem:[%s3856_s10 + $0x20] sm:$0xff] }
 0x210   :  { %2937 = vmatprep.subr.bf16.mxu1 %v3081_v50  ;;  %v2980_v22 = vpack.c.bf16 %v2362_v20, %v2361_v19  ;;  %v1829_v19 = vld [vmem:[%s3856_s10 + $0x28] sm:$0xff] }
 0x211   :  { %v3006_v20 = vpack.c.bf16 %v1829_v19, %v1828_v18 }
 0x213   :  { %2939 = vmatpush1.bf16.msra.mxu1 %v2938_v24  ;;  %v1566_v24 = vld [vmem:[%s3854_s8 + $0x8] sm:$0xff] }
 0x214   :  { %2940 = vmatprep.subr.bf16.mxu1 %v3081_v50 }
 0x215   :  { %v1033_v25 = vld [vmem:[#allocation2 + $0x58] sm:$0xff] }
 0x216   :  { %v1032_v26 = vld [vmem:[#allocation2 + $0x50] sm:$0xff] }
 0x217   :  { %v2703_v27 = vpop.f32.mrb[10].mxu1  ;;  %v2941_v28 = vpack.c.bf16 %v1033_v25, %v1032_v26  ;;  %v1569_v25 = vld [vmem:[%s3854_s8 + $0x20] sm:$0x1] }
 0x218   :  { %927 = vst.msk [vmem:[#allocation2 + $0x78] sm:$0xff] %vm239_vm2, %v2703_v27  ;;  %v917_v29 = vpop.f32.mrb[11].mxu1  ;;  %v2984_v26 = vpack.c.bf16 %v1569_v25, %v1566_v24  ;;  %v1565_v27 = vld [vmem:[%s3854_s8] sm:$0xff]  ;;  %v1830_v24 = vld [vmem:[%s3856_s10 + $0x30] sm:$0xff]  ;;  %v1831_v25 = vld [vmem:[%s3856_s10 + $0x38] sm:$0xff] }
 0x219   :  { %926 = vst.msk [vmem:[#allocation2 + $0x70] sm:$0xff] %vm239_vm2, %v917_v29  ;;  %2942 = vmatpush1.bf16.msra.mxu1 %v2941_v28  ;;  %v1568_v28 = vld [vmem:[%s3854_s8 + $0x18] sm:$0x1]  ;;  %v1567_v29 = vld [vmem:[%s3854_s8 + $0x10] sm:$0xff] }
 0x21a   :  { %2943 = vmatprep.subr.bf16.mxu1 %v3081_v50  ;;  %v2987_v30 = vpack.c.bf16 %v1568_v28, %v1565_v27  ;;  %v1848_v27 = vld [vmem:[%s3856_s10 + $0xc0] sm:$0xff]  ;;  %v1849_v28 = vld [vmem:[%s3856_s10 + $0xc8] sm:$0xff] }
 0x21d   :  { %2945 = vmatpush1.bf16.msra.mxu1 %v2944_v32  ;;  %v2990_v32 = vpack.c.bf16 %v1570_v31, %v1567_v29  ;;  %v3012_v29 = vpack.c.bf16 %v1849_v28, %v1848_v27  ;;  %v1833_v31 = vld [vmem:[%s3856_s10 + $0x48] sm:$0xff] }
 0x21e   :  { %2946 = vmatprep.subr.bf16.mxu1 %v3081_v50 }
 0x21f   :  { %v1037_v33 = vld [vmem:[#allocation2 + $0x78] sm:$0xff] }
 0x220   :  { %v1036_v34 = vld [vmem:[#allocation2 + $0x70] sm:$0xff] }
 0x221   :  { %v2947_v35 = vpack.c.bf16 %v1037_v33, %v1036_v34  ;;  %v3083_v33 = vmov 0.0   ;;  %v1840_v34 = vld [vmem:[%s3856_s10 + $0x80] sm:$0xff] }
 0x223   :  { %2948 = vmatpush1.bf16.msra.mxu1 %v2947_v35  ;;  %v1841_v35 = vld [vmem:[%s3856_s10 + $0x88] sm:$0xff] }
 0x224   :  { %2949 = vmatprep.subr.bf16.mxu1 %v3081_v50  ;;  %v2996_v36 = vpack.c.bf16 %v1841_v35, %v1840_v34  ;;  %v1861_v34 = vld [vmem:[%s3857_s11] sm:$0xff]  ;;  %v1850_v35 = vld [vmem:[%s3856_s10 + $0xd0] sm:$0xff] }
 0x227   :  { %2951 = vmatpush1.bf16.msra.mxu1 %v2950_v38 }
 0x228   :  { %2992 = vmatprep.subr.msk.bf16.mxu1 %vm2985_vm6, %v2990_v32 }
 0x22a   :  { %1142 = vmatmul.mubr.f32.vlgmr.msra.gmra.mrb[12].mxu1 %v1014_v39 }
 0x22b   :  { %2331 = vmatprep.mubr.msk.f32.mxu1 %vm1064_vm3, %v1017_v40  ;;  %2995 = vmatpush3.bf16.msk.msra.mxu1 %vm2985_vm6, %v2990_v32 }
 0x22c   :  { %2791 = vmatprep.subr.mxu1 %v3083_v33 }
 0x22e   :  { %1147 = vmatmul.mubr.f32.gmra.mrb[14].mxu1 %v1016_v41 }
 0x22f   :  { %2332 = vmatprep.mubr.msk.f32.mxu1 %vm1064_vm3, %v1019_v42 }
 0x232   :  { %1152 = vmatmul.mubr.f32.gmra.mrb[16].mxu1 %v1018_v43 }
 0x233   :  { %2333 = vmatprep.mubr.msk.f32.mxu1 %vm1064_vm3, %v1021_v44 }
 0x236   :  { %1157 = vmatmul.mubr.f32.gmra.mrb[18].mxu1 %v1020_v45 }
 0x2fd   :  { %v1143_v55 = vpop.f32.mrb[12].mxu1 }
 0x2fe   :  { %v1144_v56 = vadd.f32 %v1143_v55, %v1047_v54  ;;  %v1145_v57 = vpop.f32.mrb[13].mxu1 }
 0x300   :  { %2727 = vmatprep.mubr.msk.f32.mxu0 %vm239_vm2, %v1144_v56 }
 0x301   :  { %v1148_v61 = vpop.f32.mrb[14].mxu1 }
 0x302   :  { %v1149_v62 = vadd.f32 %v1148_v61, %v1052_v60  ;;  %v1150_v63 = vpop.f32.mrb[15].mxu1 }
 0x304   :  { %2728 = vmatmul.mubr.msk.f32.vlgmr.msra.gmra.mrb[14].mxu0 %vm239_vm2, %v1149_v62 }
 0x305   :  { %v1153_v2 = vpop.f32.mrb[16].mxu1  ;;  %2963 = vmatpush3.bf16.msra.mxu0 %v2960_v53 }
 0x306   :  { %v1154_v3 = vadd.f32 %v1153_v2, %v1057_v1  ;;  %v1155_v4 = vpop.f32.mrb[17].mxu1  ;;  %2965 = vmatprep.subr.bf16.mxu0 %v2964_v0 }
 0x308   :  { %2730 = vmatprep.mubr.msk.f32.mxu0 %vm239_vm2, %v1154_v3 }
 0x309   :  { %v1158_v9 = vpop.f32.mrb[18].mxu1  ;;  %2967 = vmatpush3.bf16.msra.mxu0 %v2964_v0 }
 0x30a   :  { %v1159_v10 = vadd.f32 %v1158_v9, %v1062_v8  ;;  %v1160_v11 = vpop.f32.mrb[19].mxu1  ;;  %2741 = vmatprep.subr.msk.mxu0 %vm103_vm1, %v2343_v5  ;;  %v2998_v8 = vpack.c.bf16 %v1825_v7, %v1824_v6  ;;  %v1842_v9 = vld [vmem:[%s3856_s10 + $0x90] sm:$0xff]  ;;  %v1769_v6 = vld [vmem:[%s3855_s9 + $0x8] sm:$0xff] }
 0x30c   :  { %2731 = vmatmul.mubr.msk.f32.gmra.mrb[16].mxu0 %vm239_vm2, %v1159_v10 }
 0x30d   :  { %2743 = vmatprep.mubr.msk.f32.mxu0 %vm239_vm2, %v1144_v56  ;;  %2742 = vmatpush3.msk.msra.mxu0 %vm103_vm1, %v2343_v5 }
 0x30e   :  { %2969 = vmatprep.subr.bf16.mxu0 %v2968_v12 }
 0x310   :  { %2744 = vmatmul.mubr.msk.f32.vlgmr.msra.gmra.mrb[18].mxu0 %vm239_vm2, %v1149_v62 }
 0x311   :  { %2971 = vmatpush3.bf16.msra.mxu0 %v2968_v12  ;;  %2746 = vmatprep.mubr.msk.f32.mxu0 %vm239_vm2, %v1154_v3  ;;  %v1826_v12 = vld [vmem:[%s3856_s10 + $0x10] sm:$0xff] }
 0x312   :  { %2973 = vmatprep.subr.bf16.mxu0 %v2972_v15  ;;  %v3002_v14 = vpack.c.bf16 %v1827_v13, %v1826_v12  ;;  %v1776_v12 = vld [vmem:[%s3855_s9 + $0x40] sm:$0xff] }
 0x314   :  { %2747 = vmatmul.mubr.msk.f32.gmra.mrb[20].mxu0 %vm239_vm2, %v1159_v10 }
 0x315   :  { %2975 = vmatpush3.bf16.msra.mxu0 %v2972_v15  ;;  %2759 = vmatprep.mubr.msk.f32.mxu0 %vm239_vm2, %v1144_v56  ;;  %v1844_v15 = vld [vmem:[%s3856_s10 + $0xa0] sm:$0xff] }
 0x316   :  { %2757 = vmatprep.subr.msk.mxu0 %vm103_vm1, %v2353_v16 }
 0x319   :  { %2758 = vmatpush3.msk.msra.mxu0 %vm103_vm1, %v2353_v16  ;;  %v1845_v16 = vld [vmem:[%s3856_s10 + $0xa8] sm:$0xff] }
 0x31a   :  { %2760 = vmatmul.mubr.msk.f32.vlgmr.msra.gmra.mrb[22].mxu0 %vm239_vm2, %v1149_v62  ;;  %2977 = vmatprep.subr.bf16.mxu0 %v2976_v21  ;;  %v3004_v17 = vpack.c.bf16 %v1845_v16, %v1844_v15 }
 0x31b   :  { %2762 = vmatprep.mubr.msk.f32.mxu0 %vm239_vm2, %v1154_v3  ;;  %2979 = vmatpush3.bf16.msra.mxu0 %v2976_v21  ;;  %v1846_v21 = vld [vmem:[%s3856_s10 + $0xb0] sm:$0xff] }
 0x31c   :  { %2981 = vmatprep.subr.bf16.mxu0 %v2980_v22 }
 0x31e   :  { %2763 = vmatmul.mubr.msk.f32.gmra.mrb[24].mxu0 %vm239_vm2, %v1159_v10 }
 0x31f   :  { %2983 = vmatpush3.bf16.msra.mxu0 %v2980_v22  ;;  %2775 = vmatprep.mubr.msk.f32.mxu0 %vm239_vm2, %v1144_v56  ;;  %v1847_v22 = vld [vmem:[%s3856_s10 + $0xb8] sm:$0xff] }
 0x320   :  { %2773 = vmatprep.subr.msk.mxu0 %vm103_vm1, %v2363_v23 }
 0x323   :  { %2774 = vmatpush3.msk.msra.mxu0 %vm103_vm1, %v2363_v23  ;;  %v3008_v23 = vpack.c.bf16 %v1847_v22, %v1846_v21  ;;  %v1774_v22 = vld [vmem:[%s3855_s9 + $0x30] sm:$0xff] }
 0x324   :  { %2776 = vmatmul.mubr.msk.f32.vlgmr.msra.gmra.mrb[26].mxu0 %vm239_vm2, %v1149_v62  ;;  %2986 = vmatprep.subr.msk.bf16.mxu0 %vm2985_vm6, %v2984_v26  ;;  %v3010_v26 = vpack.c.bf16 %v1831_v25, %v1830_v24 }
 0x325   :  { %2778 = vmatprep.mubr.msk.f32.mxu0 %vm239_vm2, %v1154_v3  ;;  %2989 = vmatpush1.bf16.msk.msra.mxu0 %vm2985_vm6, %v2987_v30  ;;  %v1832_v30 = vld [vmem:[%s3856_s10 + $0x40] sm:$0xff] }
 0x326   :  { %2997 = vmatprep.subr.bf16.mxu0 %v2996_v36  ;;  %v3014_v32 = vpack.c.bf16 %v1833_v31, %v1832_v30  ;;  %v1851_v36 = vld [vmem:[%s3856_s10 + $0xd8] sm:$0xff] }
 0x328   :  { %2779 = vmatmul.mubr.msk.f32.gmra.mrb[28].mxu0 %vm239_vm2, %v1159_v10  ;;  %v1843_v10 = vld [vmem:[%s3856_s10 + $0x98] sm:$0xff] }
 0x329   :  { %1658 = vmatprep.mubr.f32.mxu0 %v3083_v33  ;;  %v3000_v11 = vpack.c.bf16 %v1843_v10, %v1842_v9 }
 0x3d7   :  { %v2729_v37 = vpop.f32.mrb[14].mxu0 }
 0x3d8   :  { %v1248_v38 = vpop.f32.mrb[15].mxu0 }
 0x3df   :  { %v2732_v39 = vpop.f32.mrb[16].mxu0 }
 0x3e0   :  { %v1258_v40 = vpop.f32.mrb[17].mxu0 }
 0x3e3   :  { %v2745_v41 = vpop.f32.mrb[18].mxu0 }
 0x3e4   :  { %v1550_v42 = vmax.f32 %v2729_v37, %v2745_v41  ;;  %v1342_v43 = vpop.f32.mrb[19].mxu0  ;;  %v3016_v37 = vpack.c.bf16 %v1851_v36, %v1850_v35  ;;  %v1860_v41 = vld [vmem:[%s3868_s26] sm:$0x1]  ;;  %v1777_v35 = vld [vmem:[%s3855_s9 + $0x48] sm:$0xff] }
 0x3e5   :  { %v1549_v44 = vmax.f32 %v1248_v38, %v1342_v43  ;;  %v1856_v38 = vld [vmem:[%s3856_s10 + $0x100] sm:$0xff]  ;;  %v1835_v43 = vld [vmem:[%s3856_s10 + $0x58] sm:$0xff] }
 0x3e7   :  { %v2748_v45 = vpop.f32.mrb[20].mxu0 }
 0x3e8   :  { %v1552_v46 = vmax.f32 %v2732_v39, %v2748_v45  ;;  %v1352_v47 = vpop.f32.mrb[21].mxu0  ;;  %v1857_v39 = vld [vmem:[%s3856_s10 + $0x108] sm:$0xff]  ;;  %v1852_v45 = vld [vmem:[%s3856_s10 + $0xe0] sm:$0xff] }
 0x3e9   :  { %v1551_v48 = vmax.f32 %v1258_v40, %v1352_v47  ;;  %v1834_v40 = vld [vmem:[%s3856_s10 + $0x50] sm:$0xff] }
 0x3ea   :  { %v1858_v47 = vld [vmem:[%s3856_s10 + $0x110] sm:$0xff] }
 0x3ed   :  { %v2761_v49 = vpop.f32.mrb[22].mxu0 }
 0x3ee   :  { %v1436_v51 = vpop.f32.mrb[23].mxu0 }
 0x3f1   :  { %v2764_v52 = vpop.f32.mrb[24].mxu0 }
 0x3f2   :  { %v1446_v53 = vpop.f32.mrb[25].mxu0 }
 0x3f7   :  { %v2777_v54 = vpop.f32.mrb[26].mxu0 }
 0x3f8   :  { %v1554_v55 = vmax.f32 %v2761_v49, %v2777_v54  ;;  %v1530_v56 = vpop.f32.mrb[27].mxu0  ;;  %v1859_v49 = vld [vmem:[%s3856_s10 + $0x118] sm:$0xff] }
 0x3f9   :  { %v1553_v57 = vmax.f32 %v1436_v51, %v1530_v56  ;;  %v1836_v51 = vld [vmem:[%s3856_s10 + $0x60] sm:$0xff]  ;;  %v1855_v56 = vld [vmem:[%s3856_s10 + $0xf8] sm:$0xff] }
 0x3fa   :  { %v1558_v58 = vmax.f32 %v1550_v42, %v1554_v55  ;;  %v3029_v42 = vpack.c.bf16 %v1857_v39, %v1856_v38  ;;  %v1854_v55 = vld [vmem:[%s3856_s10 + $0xf0] sm:$0xff] }
 0x3fb   :  { %v1557_v59 = vmax.f32 %v1549_v44, %v1553_v57  ;;  %v2780_v60 = vpop.f32.mrb[28].mxu0  ;;  %v3018_v44 = vpack.c.bf16 %v1835_v43, %v1834_v40  ;;  %v3024_v57 = vpack.c.bf16 %v1855_v56, %v1854_v55  ;;  %v1778_v38 = vld [vmem:[%s3855_s9 + $0x50] sm:$0xff] }
 0x3fc   :  { %v1556_v61 = vmax.f32 %v2764_v52, %v2780_v60  ;;  %v1540_v62 = vpop.f32.mrb[29].mxu0  ;;  %v1562_v1 = vmax.f32 %v1558_v58, 0.0  ;;  %v1837_v52 = vld [vmem:[%s3856_s10 + $0x68] sm:$0xff]  ;;  %v1838_v58 = vld [vmem:[%s3856_s10 + $0x70] sm:$0xff] }
 0x3fd   :  { %v1561_v63 = vmax.f32 %v1557_v59, 0.0  ;;  %v1555_v0 = vmax.f32 %v1446_v53, %v1540_v62  ;;  %v3032_v53 = vpack.c.bf16 %v1859_v49, %v1858_v47  ;;  %v3022_v54 = vpack.c.bf16 %v1837_v52, %v1836_v51  ;;  %v1839_v59 = vld [vmem:[%s3856_s10 + $0x78] sm:$0xff] }
 0x3fe   :  { %v1560_v2 = vmax.f32 %v1552_v46, %v1556_v61  ;;  %v1853_v46 = vld [vmem:[%s3856_s10 + $0xe8] sm:$0xff]  ;;  %v3026_v60 = vpack.c.bf16 %v1839_v59, %v1838_v58 }
 0x3ff   :  { %v1559_v3 = vmax.f32 %v1551_v48, %v1555_v0  ;;  %2371 = vmatmul.mubr.msk.f32.vlgmr.msra.gmra.mrb[30].mxu0 %vm1571_vm7, %v1561_v63  ;;  %2785 = vmatprep.mubr.msk.f32.mxu1 %vm1571_vm7, %v1561_v63  ;;  %v3020_v48 = vpack.c.bf16 %v1853_v46, %v1852_v45  ;;  %v1773_v61 = vld [vmem:[%s3855_s9 + $0x28] sm:$0xff]  ;;  %v1770_v63 = vld [vmem:[%s3855_s9 + $0x10] sm:$0xff] }
 0x400   :  { %2786 = vmatmul.mubr.msk.f32.vlgmr.msra.gmra.mrb[20].mxu1 %vm1571_vm7, %v1562_v1  ;;  %1664 = vmatprep.mubr.f32.mxu0 %v3083_v33  ;;  %v1564_v5 = vmax.f32 %v1560_v2, 0.0  ;;  %v1768_v2 = vld [vmem:[%s3855_s9] sm:$0xff] }
 0x401   :  { %v1563_v4 = vmax.f32 %v1559_v3, 0.0  ;;  %2999 = vmatpush3.bf16.msra.mxu0 %v2998_v8  ;;  %2792 = vmatpush3.msra.mxu1 %v1861_v34  ;;  %v1772_v8 = vld [vmem:[%s3855_s9 + $0x20] sm:$0xff] }
 0x402   :  { %3001 = vmatprep.subr.bf16.mxu0 %v3000_v11  ;;  %3028 = vmatprep.subr.bf16.mxu1 %v3081_v50  ;;  %v1779_v11 = vld [vmem:[%s3855_s9 + $0x58] sm:$0xff] }
 0x403   :  { %2372 = vmatmul.mubr.msk.f32.gmra.mrb[32].mxu0 %vm1571_vm7, %v1562_v1  ;;  %2788 = vmatprep.mubr.msk.f32.mxu1 %vm1571_vm7, %v1563_v4 }
 0x404   :  { %2789 = vmatmul.mubr.msk.f32.gmra.mrb[22].mxu1 %vm1571_vm7, %v1564_v5  ;;  %1670 = vmatprep.mubr.f32.mxu0 %v3083_v33 }
 0x405   :  { %3003 = vmatpush3.bf16.msra.mxu0 %v3002_v14  ;;  %2793 = vmatprep.mubr.msk.f32.mxu1 %vm3084_vm8, %v3083_v33 }
 0x406   :  { %3005 = vmatprep.subr.bf16.mxu0 %v3004_v17 }
 0x407   :  { %2373 = vmatmul.mubr.msk.f32.gmra.mrb[34].mxu0 %vm1571_vm7, %v1563_v4 }
 0x408   :  { %1676 = vmatprep.mubr.f32.mxu0 %v3083_v33  ;;  %2794 = vmatmul.mubr.msk.f32.vlgmr.msra.gmra.mrb[24].mxu1 %vm1862_vm9, %v1860_v41 }
 0x409   :  { %3007 = vmatpush3.bf16.msra.mxu0 %v3006_v20  ;;  %3030 = vmatpush3.bf16.msra.mxu1 %v3029_v42 }
 0x40a   :  { %3009 = vmatprep.subr.bf16.mxu0 %v3008_v23  ;;  %2804 = vmatprep.mubr.msk.f32.mxu1 %vm3084_vm8, %v3083_v33 }
 0x40b   :  { %2374 = vmatmul.mubr.msk.f32.gmra.mrb[36].mxu0 %vm1571_vm7, %v1564_v5  ;;  %3031 = vmatprep.subr.bf16.mxu1 %v3081_v50  ;;  %v1771_v5 = vld [vmem:[%s3855_s9 + $0x18] sm:$0xff] }
 0x40d   :  { %3011 = vmatpush3.bf16.msra.mxu0 %v3010_v26  ;;  %3033 = vmatpush3.bf16.msra.mxu1 %v3032_v53  ;;  %v1775_v26 = vld [vmem:[%s3855_s9 + $0x38] sm:$0xff] }
 0x40e   :  { %3013 = vmatprep.subr.bf16.mxu0 %v3012_v29  ;;  %3034 = vmatprep.subr.bf16.mxu1 %v3081_v50 }
 0x411   :  { %3015 = vmatpush3.bf16.msra.mxu0 %v3014_v32 }
 0x412   :  { %3017 = vmatprep.subr.bf16.mxu0 %v3016_v37 }
 0x415   :  { %3019 = vmatpush3.bf16.msra.mxu0 %v3018_v44 }
 0x416   :  { %3021 = vmatprep.subr.bf16.mxu0 %v3020_v48 }
 0x419   :  { %3023 = vmatpush3.bf16.msra.mxu0 %v3022_v54 }
 0x41a   :  { %3025 = vmatprep.subr.bf16.mxu0 %v3024_v57 }
 0x41d   :  { %3027 = vmatpush3.bf16.msra.mxu0 %v3026_v60 }
 0x4d2   :  { %v1660_v62 = vpop.f32.mrb[30].mxu0 }
 0x4d3   :  { %v1662_v0 = vpop.f32.mrb[31].mxu0  ;;  %v2787_v1 = vpop.f32.mrb[20].mxu1  ;;  %v1780_v13 = vmul.f32 %v1768_v2, %v1660_v62 }
 0x4d4   :  { %v1785_v3 = vmul.f32 %v2787_v1, %v1773_v61  ;;  %v1749_v4 = vpop.f32.mrb[21].mxu1  ;;  %v1781_v18 = vmul.f32 %v1769_v6, %v1662_v0 }
 0x4d5   :  { %v1782_v7 = vmul.f32 %v1770_v63, %v1749_v4  ;;  %v2081_v4 = vld [vmem:[%s3859_s13] sm:$0xff] }
 0x4d6   :  { %v1812_v9 = vsel %vm1810_vm10, %v1785_v3, 0.0  ;;  %v1666_v10 = vpop.f32.mrb[32].mxu0 }
 0x4d7   :  { %v1811_v14 = vsel %vm1810_vm10, %v1782_v7, 0.0  ;;  %v1783_v15 = vmul.f32 %v1771_v5, %v1666_v10  ;;  %v1668_v16 = vpop.f32.mrb[33].mxu0  ;;  %v2790_v17 = vpop.f32.mrb[22].mxu1  ;;  %v2082_v5 = vld [vmem:[%s3859_s13 + $0x8] sm:$0xff]  ;;  %v2083_v7 = vld [vmem:[%s3859_s13 + $0x10] sm:$0xff] }
 0x4d8   :  { %v1813_v19 = vadd.f32 %v1812_v9, %v1811_v14  ;;  %v1784_v20 = vmul.f32 %v1772_v8, %v1668_v16  ;;  %v1759_v21 = vpop.f32.mrb[23].mxu1  ;;  %v1791_v24 = vmul.f32 %v2790_v17, %v1779_v11  ;;  %v3035_v6 = vpack.c.bf16 %v2082_v5, %v2081_v4  ;;  %v2084_v8 = vld [vmem:[%s3859_s13 + $0x18] sm:$0xff]  ;;  %v2079_v16 = vld [vmem:[%s3858_s12] sm:$0x1] }
 0x4d9   :  { %v1792_v23 = vadd.f32 %v1783_v15, %v1780_v13  ;;  %v1788_v25 = vmul.f32 %v1776_v12, %v1759_v21  ;;  %v3038_v9 = vpack.c.bf16 %v2084_v8, %v2083_v7  ;;  %v2162_v21 = vld [vmem:[%s3861_s15 + $0x10] sm:$0xff] }
 0x4da   :  { %v1801_v27 = vadd.f32 %v1784_v20, %v1781_v18  ;;  %v1672_v28 = vpop.f32.mrb[34].mxu0  ;;  %v1816_v36 = vsel %vm1810_vm10, %v1791_v24, 0.0  ;;  %v2161_v20 = vld [vmem:[%s3861_s15 + $0x8] sm:$0xff] }
 0x4db   :  { %v1814_v29 = vsel %vm1810_vm10, %v1788_v25, 0.0  ;;  %v1786_v30 = vmul.f32 %v1774_v22, %v1672_v28  ;;  %v1674_v31 = vpop.f32.mrb[35].mxu0  ;;  %v1932_v2 = vpop.f32.mrb[24].mxu1 }
 0x4dc   :  { %v1815_v32 = vadd.f32 %v1814_v29, %v1813_v19  ;;  %v1787_v34 = vmul.f32 %v1775_v26, %v1674_v31  ;;  %v2795_v3 = vpop.f32.mrb[25].mxu1  ;;  %v2160_v19 = vld [vmem:[%s3861_s15] sm:$0xff] }
 0x4dd   :  { %v1793_v37 = vadd.f32 %v1792_v23, %v1786_v30  ;;  %v3041_v22 = vpack.c.bf16 %v2161_v20, %v2160_v19  ;;  %v2163_v23 = vld [vmem:[%s3861_s15 + $0x18] sm:$0xff]  ;;  %v2164_v29 = vld [vmem:[%s3862_s16] sm:$0x1]  ;;  %s3085_s15 = smov [#allocation3]  }
 0x4de   :  { %v1817_v39 = vadd.f32 %v1816_v36, %v1815_v32  ;;  %v1802_v40 = vadd.f32 %v1801_v27, %v1787_v34  ;;  %v1678_v41 = vpop.f32.mrb[36].mxu0  ;;  %v3044_v24 = vpack.c.bf16 %v2163_v23, %v2162_v21  ;;  %s2246_s30 = sshll.u32 %s3085_s15, 4  ;;  %s2247_s30 = int_to_ptr.vmem [resolvable:$true] %s2246_s30 }
 0x4df   :  { %v1789_v42 = vmul.f32 %v1777_v35, %v1678_v41  ;;  %v1680_v43 = vpop.f32.mrb[37].mxu0  ;;  %s3060_s11 = scalar_lea.vmem %s2247_s30, 32  ;;  %p3061_p1 = scmp.lt.s32.totalorder %s2247_s30, %s2247_s30 }
 0x4e0   :  { %v1818_v44 = vrot.slane %v1817_v39, 4  ;;  %v1790_v45 = vmul.f32 %v1778_v38, %v1680_v43 }
 0x4e1   :  { %v1794_v46 = vadd.f32 %v1793_v37, %v1789_v42 }
 0x4e2   :  { %v1819_v47 = vadd.f32 %v1818_v44, %v1817_v39  ;;  %v1803_v48 = vadd.f32 %v1802_v40, %v1790_v45 }
 0x4e3   :  { %v1795_v49 = vrot.slane %v1794_v46, 4 }
 0x4e4   :  { %v1820_v51 = vrot.slane %v1819_v47, 2  ;;  %v1804_v52 = vrot.slane %v1803_v48, 4 }
 0x4e5   :  { %v1796_v53 = vadd.f32 %v1795_v49, %v1794_v46 }
 0x4e6   :  { %v1821_v54 = vadd.f32 %v1820_v51, %v1819_v47  ;;  %v1805_v55 = vadd.f32 %v1804_v52, %v1803_v48 }
 0x4e7   :  { %v1797_v56 = vrot.slane %v1796_v53, 2 }
 0x4e8   :  { %v1822_v57 = vrot.slane %v1821_v54, 1  ;;  %v1806_v58 = vrot.slane %v1805_v55, 2 }
 0x4e9   :  { %v1798_v59 = vadd.f32 %v1797_v56, %v1796_v53 }
 0x4ea   :  { %v1823_v60 = vadd.f32 %v1822_v57, %v1821_v54  ;;  %v1807_v61 = vadd.f32 %v1806_v58, %v1805_v55 }
 0x4eb   :  { %v1799_v62 = vrot.slane %v1798_v59, 1 }
 0x4ec   :  { %2805 = vmatmul.mubr.msk.f32.vlgmr.msra.gmra.mrb[26].mxu1 %vm1810_vm10, %v1823_v60  ;;  %v1808_v63 = vrot.slane %v1807_v61, 1 }
 0x4ed   :  { %2815 = vmatprep.mubr.msk.f32.mxu1 %vm3084_vm8, %v3083_v33  ;;  %v1800_v1 = vadd.f32 %v1799_v62, %v1798_v59  ;;  %3036 = vmatpush3.bf16.msra.mxu1 %v3035_v6 }
 0x4ee   :  { %v1809_v0 = vadd.f32 %v1808_v63, %v1807_v61  ;;  %3037 = vmatprep.subr.bf16.mxu1 %v3081_v50 }
 0x4f0   :  { %2003 = vmatprep.mubr.f32.mxu0 %v1809_v0 }
 0x4f1   :  { %2004 = vmatmul.mubr.f32.vlgmr.msra.gmra.mrb[38].mxu0 %v1800_v1  ;;  %3039 = vmatpush3.bf16.msra.mxu1 %v3038_v9 }
 0x4f2   :  { %3040 = vmatprep.subr.bf16.mxu1 %v3081_v50 }
 0x5bf   :  { %v2075_v10 = vpop.f32.mrb[26].mxu1 }
 0x5c0   :  { %v2806_v11 = vpop.f32.mrb[27].mxu1 }
 0x5c4   :  { %v2544_v12 = vpop.f32.mrb[38].mxu0 }
 0x5c5   :  { %v2545_v13 = vpop.f32.mrb[39].mxu0 }
 0x5c6   :  { %v2546_v14 = vadd.f32 %v2545_v13, %v2544_v12 }
 0x5c8   :  { %v2006_v15 = vadd.f32 %v2546_v14, %v1932_v2 }
 0x5ca   :  { %v2076_v17 = vadd.f32 %v2075_v10, %v2006_v15 }
 0x5cc   :  { %v2080_v18 = vadd.f32 %v2079_v16, %v2076_v17 }
 0x5ce   :  { %2816 = vmatmul.mubr.msk.f32.vlgmr.msra.gmra.mrb[28].mxu1 %vm1810_vm10, %v2080_v18 }
 0x5cf   :  { %2826 = vmatprep.mubr.msk.f32.mxu1 %vm3084_vm8, %v3083_v33  ;;  %3042 = vmatpush3.bf16.msra.mxu1 %v3041_v22  ;;  %v2085_v33 = vld [vmem:[%s3860_s14] sm:$0x1]  ;;  %s3056_s14 = scalar_lea.vmem %s2247_s30, 16 }
 0x5d0   :  { %3043 = vmatprep.subr.bf16.mxu1 %v3081_v50  ;;  %p3057_p0 = scmp.ne.s32.totalorder %s2247_s30, %s3056_s14  ;;  %p3062_p2 = scmp.lt.s32.totalorder %s3060_s11, %s3056_s14 }
 0x5d2   :  { %p3063_p3 = por %p3062_p2, %p3061_p1 }
 0x5d3   :  { %3045 = vmatpush3.bf16.msra.mxu1 %v3044_v24 }
 0x5d4   :  { %p3064_p4 = pnand %p3063_p3, %p3057_p0 }
 0x6a1   :  { %v2155_v25 = vpop.f32.mrb[28].mxu1 }
 0x6a2   :  { %v2156_v26 = vadd.f32 %v2155_v25, %v2085_v33  ;;  %v2817_v27 = vpop.f32.mrb[29].mxu1 }
 0x6a4   :  { %3054 = vtanh.f32 %v2156_v26 }
 0x6ae   :  { %v3055_v28 = vpop.eup %3054 }
 0x6af   :  { %2827 = vmatmul.mubr.msk.f32.vlgmr.msra.gmra.mrb[30].mxu1 %vm1810_vm10, %v3055_v28 }
 0x782   :  { %v2234_v30 = vpop.f32.mrb[30].mxu1 }
 0x783   :  { %v2235_v50 = vadd.f32 %v2234_v30, %v2164_v29  ;;  %v2828_v31 = vpop.f32.mrb[31].mxu1 }
 0x785   :  { %2239 = vst.msk [vmem:[#allocation3] sm:$0x1] %vm2238_vm11, %v2235_v50 }
 0x786   :  { %3067 = shalt.err (!%p3064_p4)
}
 0x787   :  { %s3068_s16 = scalar_lea.hbm %s3863_s17, 16 }
 0x788   :  { %p3069_p5 = scmp.ne.s32.totalorder %s3863_s17, %s3068_s16  ;;  %p3072_p6 = scmp.lt.u32.totalorder %s3068_s16, %s3863_s17 }
 0x78a   :  { %p3074_p7 = pnand %p3072_p6, %p3069_p5 }
 0x78c   :  { %3077 = shalt.err (!%p3074_p7)
}
 0x78d   :  { %2249 = dma.vmem_to_hbm [thread:$0]  %s2247_s30, 16, %s3863_s17, [#allocation4]  }
 0x78e   :  { %3078 = dma.done.wait [#allocation4], 16  }
 0x78f   :  { %3079 = vsyncadd [#allocation4], 4294967280 }
 0x790   :  { %2253 = vsyncpa [#allocation4], 1 }

</bundles_post_ra>
